<compile_context>
chip_gen: v7x
topology: tpu7x:2x2x1
jax: 0.10.0
libtpu: 0.0.40
codegen_flags: <defaults>
</compile_context>

<pallas_src>
import functools
import math

import jax
import jax.numpy as jnp
from jax.experimental import pallas as pl
from jax.experimental.pallas import tpu as pltpu

_OFFS3 = tuple((di, dj) for di in range(3) for dj in range(3))


# ----------------------------------------------------------------- in-kernel helpers
def _silu(y):
    """Numerically stable SiLU; exp + approx reciprocal run on the EUP slot."""
    e = jnp.exp(-jnp.abs(y))
    r = pl.reciprocal(1.0 + e, approx=True)
    return y * jnp.where(y >= 0, r, e * r)


def _fill_padded(pad_ref, x, h, w):
    """Zero a (h+2, w+2, C) VMEM scratch and write x into its interior (in-kernel pad=1)."""
    pad_ref[...] = jnp.zeros_like(pad_ref)
    pad_ref[1:h + 1, 1:w + 1, :] = x


def _tap_patch(xp, offsets, ho, wo):
    """xp: (Hp, Wp, Cin) bf16 padded tile (value).  Returns (ho*wo, len(offsets)*Cin) bf16,
    column order (tap, cin) -- matches _tapcat_weight row order."""
    taps = [xp[di:di + ho, dj:dj + wo, :] for (di, dj) in offsets]
    return jnp.concatenate(taps, axis=-1).reshape(ho * wo, -1)


def _group_norm(acc, gmat_ref, gamma_ref, beta_ref, eps):
    """Two-pass GroupNorm over an (M, C) f32 tile.
    gmat[c, c'] = 1/(channels_per_group * M) if group(c)==group(c') else 0."""
    mean = jnp.dot(jnp.sum(acc, axis=0, keepdims=True), gmat_ref[...],
                   preferred_element_type=jnp.float32)
    cen = acc - mean
    var = jnp.dot(jnp.sum(cen * cen, axis=0, keepdims=True), gmat_ref[...],
                  preferred_element_type=jnp.float32)
    return cen * jax.lax.rsqrt(var + eps) * gamma_ref[...] + beta_ref[...]


# ------------------------------------------------------------------------- kernels
def _conv3x3_kernel(x_ref, w_ref, b_ref, o_ref, xpad, *, H, W, Cin, Cout):
    """3x3 / stride 1 / pad 1 conv: in-kernel zero pad, one tap-concat MXU matmul."""
    _fill_padded(xpad, x_ref[0], H, W)
    p = _tap_patch(xpad[...], _OFFS3, H, W)                        # (H*W, 9*Cin) bf16
    acc = jnp.dot(p, w_ref[...], preferred_element_type=jnp.float32) + b_ref[...]
    o_ref[0] = acc.reshape(H, W, Cout).astype(o_ref.dtype)


def _conv1x1_kernel(x_ref, w_ref, b_ref, o_ref, *, H, W, Cin, Cout):
    x = x_ref[0].reshape(H * W, Cin)
    acc = jnp.dot(x, w_ref[...], preferred_element_type=jnp.float32) + b_ref[...]
    o_ref[0] = acc.reshape(H, W, Cout).astype(o_ref.dtype)


def _conv4x4_s2_kernel(x_ref, w_ref, b_ref, o_ref, *, Ho, Wo, Cin, Cout):
    """4x4 / stride 2 / pad 1 conv on a parity-decomposed padded input, one matmul (K=16*Cin)."""
    xq = x_ref[0]                                                  # (4, Hq, Wq, Cin) bf16
    taps = []
    for di in range(4):
        for dj in range(4):
            plane = (di % 2) * 2 + (dj % 2)
            taps.append(xq[plane:plane + 1,
                           di // 2:di // 2 + Ho,
                           dj // 2:dj // 2 + Wo, :])
    p = jnp.concatenate(taps, axis=-1).reshape(Ho * Wo, 16 * Cin)  # (Ho*Wo, 16*Cin)
    acc = jnp.dot(p, w_ref[...], preferred_element_type=jnp.float32) + b_ref[...]
    o_ref[0] = acc.reshape(Ho, Wo, Cout).astype(o_ref.dtype)


def _upconv_kernel(x_ref, w_ref, b_ref, o_ref, xpad, *, H, W, Cin, Cout):
    """Nearest-x2 upsample fused into conv3x3(pad=1), per (image, output-row-parity).

    Weights are pre-folded per parity in the wrapper, so this is just a 3x3-style
    tap-concat matmul with N = 2*Cout (both column parities at once).  The store layout
    (1, H, 1, W, 2*Cout) reshapes for free to the interleaved (2H, 2W, Cout) image.
    """
    _fill_padded(xpad, x_ref[0], H, W)
    p = _tap_patch(xpad[...], _OFFS3, H, W)                        # (H*W, 9*Cin) bf16
    acc = jnp.dot(p, w_ref[0], preferred_element_type=jnp.float32) + b_ref[...]
    o_ref[...] = acc.reshape(1, H, 1, W, 2 * Cout).astype(o_ref.dtype)


def _resnet_kernel(x_ref, w1_ref, b1_ref, g1_ref, be1_ref, sc_ref, sh_ref,
                   w2_ref, b2_ref, g2_ref, be2_ref, gmat_ref, o_ref,
                   xpad, hpad, *, H, W, C, eps):
    """Fused ResnetBlock (identity residual): two ConvBlocks + residual add, one image."""
    # --- block1: conv3x3 + GN + (scale+1)*x + shift + SiLU
    _fill_padded(xpad, x_ref[0], H, W)
    p1 = _tap_patch(xpad[...], _OFFS3, H, W)
    acc1 = jnp.dot(p1, w1_ref[...], preferred_element_type=jnp.float32) + b1_ref[...]
    y1 = _group_norm(acc1, gmat_ref, g1_ref, be1_ref, eps)
    y1 = y1 * (sc_ref[0] + 1.0) + sh_ref[0]
    h1 = _silu(y1)                                                 # (H*W, C) f32
    # --- block2: conv3x3 + GN + SiLU (block1 output never leaves VMEM)
    _fill_padded(hpad, h1.reshape(H, W, C).astype(hpad.dtype), H, W)
    p2 = _tap_patch(hpad[...], _OFFS3, H, W)
    acc2 = jnp.dot(p2, w2_ref[...], preferred_element_type=jnp.float32) + b2_ref[...]
    y2 = _group_norm(acc2, gmat_ref, g2_ref, be2_ref, eps)
    h2 = _silu(y2)
    # --- identity residual (in_channels == out_channels for every ResnetBlock here)
    out = h2.reshape(H, W, C) + x_ref[0].astype(jnp.float32)
    o_ref[0] = out.astype(o_ref.dtype)


def _attn_kernel(x_ref, wqkv_ref, bqkv_ref, wo_ref, bo_ref, o_ref, *, C):
    """Single-head spatial self-attention (+residual), one image; fused qkv matmul."""
    x = x_ref[0]                                                   # (N, C) bf16
    qkv = jnp.dot(x, wqkv_ref[...], preferred_element_type=jnp.float32) + bqkv_ref[...]
    q = qkv[:, :C].astype(jnp.bfloat16)                            # 1/sqrt(C) folded into wq
    k = qkv[:, C:2 * C].astype(jnp.bfloat16)
    v = qkv[:, 2 * C:].astype(jnp.bfloat16)
    s = jnp.einsum("nc,mc->nm", q, k, preferred_element_type=jnp.float32)
    s = s - jnp.max(s, axis=-1, keepdims=True)
    prob = jnp.exp(s)
    prob = prob * pl.reciprocal(jnp.sum(prob, axis=-1, keepdims=True), approx=True)
    attn = jnp.dot(prob.astype(jnp.bfloat16), v, preferred_element_type=jnp.float32)
    out = jnp.dot(attn.astype(jnp.bfloat16), wo_ref[...],
                  preferred_element_type=jnp.float32) + bo_ref[...]
    o_ref[0] = (out + x.astype(jnp.float32)).astype(o_ref.dtype)


# ---------------------------------------------------------------- weight preprocessing
def _tapcat_weight(w_oihw):
    """(Cout, Cin, kh, kw) -> (kh*kw*Cin, Cout) bf16, row order (tap, cin)."""
    cout, cin, kh, kw = w_oihw.shape
    return jnp.transpose(w_oihw, (2, 3, 1, 0)).reshape(kh * kw * cin, cout) \
              .astype(jnp.bfloat16)


def _upconv_weight(w_oihw):
    """Pre-fold nearest-x2 upsample into the 3x3 conv weights.

    Returns (2, 9*Cin, 2*Cout): per output row parity pr, rows ordered (ci, cj, cin) over the
    3x3 window of the ORIGINAL padded image, columns ordered (pc, cout); taps of the original
    kernel mapping to the same source offset are pre-summed (f32), unused offsets are zero.
    """
    cout, cin, _, _ = w_oihw.shape
    wt = jnp.transpose(w_oihw, (2, 3, 1, 0)).astype(jnp.float32)   # (di, dj, Cin, Cout)
    w_up = jnp.zeros((2, 3, 3, cin, 2, cout), jnp.float32)
    for pr in range(2):
        for pc in range(2):
            for di in range(3):
                for dj in range(3):
                    ci = (pr + di + 1) // 2
                    cj = (pc + dj + 1) // 2
                    w_up = w_up.at[pr, ci, cj, :, pc, :].add(wt[di, dj])
    return w_up.reshape(2, 9 * cin, 2 * cout).astype(jnp.bfloat16)


def _vec(b):
    return b.reshape(1, -1).astype(jnp.float32)


# ------------------------------------------------------------------- layer wrappers
_PAR = pltpu.CompilerParams(dimension_semantics=("parallel",))


def conv3x3(x, w_oihw, b):
    """Conv2d(3x3, stride 1, pad 1); bf16 in / bf16 out."""
    B, H, W, Cin = x.shape
    Cout = w_oihw.shape[0]
    kernel = functools.partial(_conv3x3_kernel, H=H, W=W, Cin=Cin, Cout=Cout)
    return pl.pallas_call(
        kernel,
        out_shape=jax.ShapeDtypeStruct((B, H, W, Cout), jnp.bfloat16),
        grid=(B,),
        in_specs=[
            pl.BlockSpec((1, H, W, Cin), lambda i: (i, 0, 0, 0)),
            pl.BlockSpec((9 * Cin, Cout), lambda i: (0, 0)),
            pl.BlockSpec((1, Cout), lambda i: (0, 0)),
        ],
        out_specs=pl.BlockSpec((1, H, W, Cout), lambda i: (i, 0, 0, 0)),
        scratch_shapes=[pltpu.VMEM((H + 2, W + 2, Cin), jnp.bfloat16)],
        compiler_params=_PAR,
    )(x, _tapcat_weight(w_oihw), _vec(b))


def conv1x1(x, w_oihw, b, out_dtype=jnp.bfloat16):
    B, H, W, Cin = x.shape
    Cout = w_oihw.shape[0]
    kernel = functools.partial(_conv1x1_kernel, H=H, W=W, Cin=Cin, Cout=Cout)
    return pl.pallas_call(
        kernel,
        out_shape=jax.ShapeDtypeStruct((B, H, W, Cout), out_dtype),
        grid=(B,),
        in_specs=[
            pl.BlockSpec((1, H, W, Cin), lambda i: (i, 0, 0, 0)),
            pl.BlockSpec((Cin, Cout), lambda i: (0, 0)),
            pl.BlockSpec((1, Cout), lambda i: (0, 0)),
        ],
        out_specs=pl.BlockSpec((1, H, W, Cout), lambda i: (i, 0, 0, 0)),
        compiler_params=_PAR,
    )(x, _tapcat_weight(w_oihw), _vec(b))


def downsample_conv(x, w_oihw, b):
    """Conv2d(4x4, stride 2, pad 1); bf16 in / bf16 out."""
    B, H, W, Cin = x.shape
    Cout = w_oihw.shape[0]
    assert H % 2 == 0 and W % 2 == 0
    Ho, Wo = H // 2, W // 2
    Hq, Wq = (H + 2) // 2, (W + 2) // 2
    xp = jnp.pad(x, ((0, 0), (1, 1), (1, 1), (0, 0)))
    # TODO(synk): this parity re-gather is still an HBM pass; in-kernel strided extraction
    #             would remove it (the tap-concat matmul below is already fused).
    planes = jnp.stack([xp[:, a::2, c::2, :] for a in range(2) for c in range(2)],
                       axis=1)                                     # (B, 4, Hq, Wq, Cin)
    kernel = functools.partial(_conv4x4_s2_kernel, Ho=Ho, Wo=Wo, Cin=Cin, Cout=Cout)
    return pl.pallas_call(
        kernel,
        out_shape=jax.ShapeDtypeStruct((B, Ho, Wo, Cout), jnp.bfloat16),
        grid=(B,),
        in_specs=[
            pl.BlockSpec((1, 4, Hq, Wq, Cin), lambda i: (i, 0, 0, 0, 0)),
            pl.BlockSpec((16 * Cin, Cout), lambda i: (0, 0)),
            pl.BlockSpec((1, Cout), lambda i: (0, 0)),
        ],
        out_specs=pl.BlockSpec((1, Ho, Wo, Cout), lambda i: (i, 0, 0, 0)),
        compiler_params=_PAR,
    )(planes, _tapcat_weight(w_oihw), _vec(b))


def upsample_conv(x, w_oihw, b):
    """UpsamplingNearest2d(x2) + Conv2d(3x3, pad 1), fused; bf16 in / bf16 out."""
    B, H, W, Cin = x.shape
    Cout = w_oihw.shape[0]
    kernel = functools.partial(_upconv_kernel, H=H, W=W, Cin=Cin, Cout=Cout)
    bb = jnp.concatenate([b, b]).reshape(1, 2 * Cout).astype(jnp.float32)
    y = pl.pallas_call(
        kernel,
        out_shape=jax.ShapeDtypeStruct((B, H, 2, W, 2 * Cout), jnp.bfloat16),
        grid=(B, 2),
        in_specs=[
            pl.BlockSpec((1, H, W, Cin), lambda i, p: (i, 0, 0, 0)),
            pl.BlockSpec((1, 9 * Cin, 2 * Cout), lambda i, p: (p, 0, 0)),
            pl.BlockSpec((1, 2 * Cout), lambda i, p: (0, 0)),
        ],
        out_specs=pl.BlockSpec((1, H, 1, W, 2 * Cout), lambda i, p: (i, 0, p, 0, 0)),
        scratch_shapes=[pltpu.VMEM((H + 2, W + 2, Cin), jnp.bfloat16)],
        compiler_params=pltpu.CompilerParams(
            dimension_semantics=("parallel", "parallel")),
    )(x, _upconv_weight(w_oihw), bb)
    # (B, H, 2, W, 2*Cout) -> (B, 2H, 2W, Cout) is a pure (free) metadata reshape.
    return y.reshape(B, 2 * H, 2 * W, Cout)


def resnet_block(p, x, time_embedding, groups=8, eps=1e-5):
    """Fused ResnetBlock: block1 + block2 + identity residual in one pallas_call."""
    B, H, W, C = x.shape
    # Reference: time_mlp = Sequential(SiLU, Linear) applied to F.silu(time_embedding)
    # -> SiLU is applied twice before the Linear, exactly as in the PyTorch source.
    t = jax.nn.silu(jax.nn.silu(time_embedding))
    ss = t @ p["time"]["w"] + p["time"]["b"]                       # tiny: plain JAX
    scale = ss[:, :C].reshape(B, 1, C).astype(jnp.float32)
    shift = ss[:, C:].reshape(B, 1, C).astype(jnp.float32)
    # TODO(synk): only the identity-residual case occurs in this architecture
    #             (ResnetBlock always has in_channels == out_channels).
    assert "residual" not in p
    cg = C // groups
    cidx = jnp.arange(C, dtype=jnp.int32) // cg
    gmat = (cidx[:, None] == cidx[None, :]).astype(jnp.float32) / float(cg * H * W)
    kernel = functools.partial(_resnet_kernel, H=H, W=W, C=C, eps=eps)
    return pl.pallas_call(
        kernel,
        out_shape=jax.ShapeDtypeStruct((B, H, W, C), jnp.bfloat16),
        grid=(B,),
        in_specs=[
            pl.BlockSpec((1, H, W, C), lambda i: (i, 0, 0, 0)),    # x
            pl.BlockSpec((9 * C, C), lambda i: (0, 0)),            # w1
            pl.BlockSpec((1, C), lambda i: (0, 0)),                # b1
            pl.BlockSpec((1, C), lambda i: (0, 0)),                # gamma1
            pl.BlockSpec((1, C), lambda i: (0, 0)),                # beta1
            pl.BlockSpec((1, 1, C), lambda i: (i, 0, 0)),          # scale
            pl.BlockSpec((1, 1, C), lambda i: (i, 0, 0)),          # shift
            pl.BlockSpec((9 * C, C), lambda i: (0, 0)),            # w2
            pl.BlockSpec((1, C), lambda i: (0, 0)),                # b2
            pl.BlockSpec((1, C), lambda i: (0, 0)),                # gamma2
            pl.BlockSpec((1, C), lambda i: (0, 0)),                # beta2
            pl.BlockSpec((C, C), lambda i: (0, 0)),                # gmat
        ],
        out_specs=pl.BlockSpec((1, H, W, C), lambda i: (i, 0, 0, 0)),
        scratch_shapes=[pltpu.VMEM((H + 2, W + 2, C), jnp.bfloat16),
                        pltpu.VMEM((H + 2, W + 2, C), jnp.bfloat16)],
        compiler_params=_PAR,
    )(x,
      _tapcat_weight(p["block1"]["conv"]["w"]), _vec(p["block1"]["conv"]["b"]),
      _vec(p["block1"]["gamma"]), _vec(p["block1"]["beta"]),
      scale, shift,
      _tapcat_weight(p["block2"]["conv"]["w"]), _vec(p["block2"]["conv"]["b"]),
      _vec(p["block2"]["gamma"]), _vec(p["block2"]["beta"]),
      gmat)


def self_attention_block(p, x):
    B, H, W, C = x.shape
    N = H * W
    seq = x.reshape(B, N, C)
    scale = 1.0 / math.sqrt(C)
    # Fuse q/k/v projections into one (C, 3C) matmul and fold 1/sqrt(C) into wq / bq.
    wqkv = jnp.concatenate([p["wq"] * scale, p["wk"], p["wv"]], axis=1) \
              .astype(jnp.bfloat16)
    bqkv = jnp.concatenate([p["bq"] * scale, p["bk"], p["bv"]]) \
              .reshape(1, 3 * C).astype(jnp.float32)
    kernel = functools.partial(_attn_kernel, C=C)
    out = pl.pallas_call(
        kernel,
        out_shape=jax.ShapeDtypeStruct((B, N, C), jnp.bfloat16),
        grid=(B,),
        in_specs=[
            pl.BlockSpec((1, N, C), lambda i: (i, 0, 0)),
            pl.BlockSpec((C, 3 * C), lambda i: (0, 0)),
            pl.BlockSpec((1, 3 * C), lambda i: (0, 0)),
            pl.BlockSpec((C, C), lambda i: (0, 0)),
            pl.BlockSpec((1, C), lambda i: (0, 0)),
        ],
        out_specs=pl.BlockSpec((1, N, C), lambda i: (i, 0, 0)),
        compiler_params=_PAR,
    )(seq, wqkv, bqkv, p["wo"].astype(jnp.bfloat16), _vec(p["bo"]))
    return out.reshape(B, H, W, C)


# ----------------------------------------------------------------------- model blocks
def denoising_block(p, x, time_embedding):
    for rp in p["resnets"]:
        x = resnet_block(rp, x, time_embedding)
    if p["use_attn"]:
        x = self_attention_block(p["attn"], x)
    state = x
    rc = p["res_conv"]
    if p["mode"] == "none":
        y = conv3x3(x, rc["w"], rc["b"])
    elif p["mode"] == "down":
        y = downsample_conv(x, rc["w"], rc["b"])
    else:  # "up": nearest x2 fused into conv3x3
        y = upsample_conv(x, rc["w"], rc["b"])
    return y, state


def sinusoidal_time_embedding(steps, dim):
    half = dim // 2
    freqs = jnp.exp(-math.log(10000.0) * jnp.arange(half, dtype=jnp.float32)
                    / (half - 1))
    args = steps.astype(jnp.float32)[:, None] * freqs[None, :]
    return jnp.concatenate([jnp.sin(args), jnp.cos(args)], axis=-1)


def denoising_model_forward(params, cfg, noisy_images, diffusion_steps,
                            inferred_original_images=None):
    """noisy_images: NCHW (B, 3, H, W); diffusion_steps: (B,). Returns NCHW (B, 3, H, W)."""
    T = cfg["time_embed_dim"]
    # Tiny time-embedding MLP: plain JAX (exact-erf GELU).
    emb = sinusoidal_time_embedding(diffusion_steps, T)
    emb = emb @ params["time_l1"]["w"] + params["time_l1"]["b"]
    emb = jax.nn.gelu(emb, approximate=False)
    emb = emb @ params["time_l2"]["w"] + params["time_l2"]["b"]

    if cfg["self_conditioning"]:
        if inferred_original_images is None:
            inferred_original_images = jnp.zeros_like(noisy_images)
        x = jnp.concatenate([noisy_images, inferred_original_images], axis=1)
    else:
        assert inferred_original_images is None
        x = noisy_images

    x = jnp.transpose(x, (0, 2, 3, 1)).astype(jnp.bfloat16)       # NCHW -> NHWC, bf16
    x = conv3x3(x, params["init_conv"]["w"], params["init_conv"]["b"])

    n_scales = len(cfg["scale_channel_multipliers"])
    encoder_states = []
    for ep in params["encoders"]:
        x, state = denoising_block(ep, x, emb)
        encoder_states.append(state)

    x, _ = denoising_block(params["mid"], x, emb)

    for j, dp in enumerate(params["decoders"]):
        block_id = n_scales - 1 - j
        x = jnp.concatenate([x, encoder_states[block_id]], axis=-1)
        x, _ = denoising_block(dp, x, emb)

    x = conv1x1(x, params["out_conv"]["w"], params["out_conv"]["b"],
                out_dtype=jnp.float32)
    return jnp.transpose(x, (0, 3, 1, 2))                          # NHWC -> NCHW


# ----------------------------------------------------------------------- param init
class KeyGen:
    def __init__(self, key):
        self.key = key

    def __call__(self):
        self.key, k = jax.random.split(self.key)
        return k


def _normal(kg, shape, scale=0.05):
    return scale * jax.random.normal(kg(), shape, dtype=jnp.float32)


def init_conv_p(kg, cin, cout, k):
    return {"w": _normal(kg, (cout, cin, k, k)), "b": _normal(kg, (cout,), 0.02)}


def init_linear_p(kg, din, dout):
    return {"w": _normal(kg, (din, dout)), "b": _normal(kg, (dout,), 0.02)}


def init_convblock_p(kg, cin, cout):
    return {"conv": init_conv_p(kg, cin, cout, 3),
            "gamma": jnp.ones((cout,), jnp.float32),
            "beta": jnp.zeros((cout,), jnp.float32)}


def init_resnet_p(kg, cin, cout, tdim):
    p = {"block1": init_convblock_p(kg, cin, cout),
         "block2": init_convblock_p(kg, cout, cout),
         "time": init_linear_p(kg, tdim, 2 * cout)}
    if cin != cout:
        p["residual"] = init_conv_p(kg, cin, cout, 1)
    return p


def init_attn_p(kg, c):
    return {"wq": _normal(kg, (c, c)), "bq": _normal(kg, (c,), 0.02),
            "wk": _normal(kg, (c, c)), "bk": _normal(kg, (c,), 0.02),
            "wv": _normal(kg, (c, c)), "bv": _normal(kg, (c,), 0.02),
            "wo": _normal(kg, (c, c)), "bo": _normal(kg, (c,), 0.02)}


def init_denoise_block_p(kg, cin, cout, tdim, n_blocks, use_attn, mode):
    p = {"resnets": [init_resnet_p(kg, cin, cin, tdim) for _ in range(n_blocks)],
         "use_attn": use_attn, "mode": mode}
    if use_attn:
        p["attn"] = init_attn_p(kg, cin)
    k = 4 if mode == "down" else 3
    p["res_conv"] = init_conv_p(kg, cin, cout, k)
    return p


def init_model_params(kg, cfg):
    C0 = cfg["initial_channels"]
    mults = cfg["scale_channel_multipliers"]
    T = cfg["time_embed_dim"]
    out_ch = [C0 * m for m in mults]
    in_ch = [C0] + out_ch[:-1]
    n = len(mults)
    p = {"time_l1": init_linear_p(kg, T, T),
         "time_l2": init_linear_p(kg, T, T),
         "init_conv": init_conv_p(kg, 6 if cfg["self_conditioning"] else 3, C0, 3)}
    p["encoders"] = []
    for i in range(n):
        is_last = i + 1 == n
        p["encoders"].append(init_denoise_block_p(
            kg, in_ch[i], out_ch[i], T, cfg["num_blocks_per_scale"],
            i in cfg["attention_block_ids"], "none" if is_last else "down"))
    p["mid"] = init_denoise_block_p(kg, out_ch[-1], out_ch[-1], T,
                                    cfg["num_blocks_per_scale"], True, "none")
    p["decoders"] = []
    for i in reversed(range(n)):
        is_last = i == 0
        p["decoders"].append(init_denoise_block_p(
            kg, in_ch[i] + out_ch[i], in_ch[i], T, cfg["num_blocks_per_scale"],
            i in cfg["attention_block_ids"], "none" if is_last else "up"))
    p["out_conv"] = init_conv_p(kg, C0, 3, 1)
    return p


# ----------------------------------------------------------------------------- main
if __name__ == "__main__":
    cfg = dict(
        initial_channels=8,
        num_blocks_per_scale=1,
        scale_channel_multipliers=(1, 2),
        attention_block_ids=frozenset({1}),
        time_embed_dim=32,
        self_conditioning=False,
    )

    root = jax.random.PRNGKey(0)
    k_params, k_img, k_step = jax.random.split(root, 3)

    params = init_model_params(KeyGen(k_params), cfg)

    noisy_images = jax.random.normal(k_img, (2, 3, 16, 16), dtype=jnp.float32)
    diffusion_steps = jax.random.randint(k_step, (2,), 0, 1000).astype(jnp.float32)

    out = denoising_model_forward(params, cfg, noisy_images, diffusion_steps, None)
    out = jax.block_until_ready(out)

    assert out.shape == (2, 3, 16, 16), out.shape
    assert jnp.all(jnp.isfinite(out))
    print("KERNEL_OK")
</pallas_src>

<mosaic_0001>
module attributes {stable_mosaic.version = 11 : i64} {
  func.func @_conv3x3_kernel(%arg0: i32, %arg1: memref<1x16x16x3xbf16, #tpu.memory_space<vmem>>, %arg2: memref<27x8xbf16, #tpu.memory_space<vmem>>, %arg3: memref<1x8xf32, #tpu.memory_space<vmem>>, %arg4: memref<1x16x16x8xbf16, #tpu.memory_space<vmem>>, %arg5: memref<18x18x3xbf16, #tpu.memory_space<vmem>>) attributes {dimension_semantics = [#tpu.dimension_semantics<parallel>], iteration_bounds = array<i64: 2>, scalar_prefetch = 0 : i64, scratch_operands = 1 : i64, tpu.core_type = #tpu.core_type<tc>, window_params = [{transform_indices = @transform_0, window_bounds = array<i64: 1, 16, 16, 3>}, {pipeline_mode = #tpu.pipeline_mode<synchronous>, transform_indices = @transform_1, window_bounds = array<i64: 27, 8>}, {pipeline_mode = #tpu.pipeline_mode<synchronous>, transform_indices = @transform_2, window_bounds = array<i64: 1, 8>}, {transform_indices = @transform_3, window_bounds = array<i64: 1, 16, 16, 8>}]} {
    %c0 = arith.constant 0 : index
    %c0_0 = arith.constant 0 : index
    %c0_1 = arith.constant 0 : index
    %c0_2 = arith.constant 0 : index
    %0 = vector.load %arg1[%c0, %c0_0, %c0_1, %c0_2] : memref<1x16x16x3xbf16, #tpu.memory_space<vmem>>, vector<1x16x16x3xbf16>
    %1 = vector.shape_cast %0 : vector<1x16x16x3xbf16> to vector<16x16x3xbf16>
    %cst = arith.constant 0.000000e+00 : bf16
    %2 = vector.broadcast %cst : bf16 to vector<18x18x3xbf16>
    %c0_3 = arith.constant 0 : index
    %c0_4 = arith.constant 0 : index
    %c0_5 = arith.constant 0 : index
    %3 = vector.load %arg5[%c0_3, %c0_4, %c0_5] : memref<18x18x3xbf16, #tpu.memory_space<vmem>>, vector<18x18x3xbf16>
    tpu.vector_store %arg5[%c0_3, %c0_4, %c0_5], %2 {strides = array<i32>} : memref<18x18x3xbf16, #tpu.memory_space<vmem>>, vector<18x18x3xbf16>,
    %c1 = arith.constant 1 : index
    %c1_6 = arith.constant 1 : index
    %c0_7 = arith.constant 0 : index
    %4 = vector.load %arg5[%c1, %c1_6, %c0_7] : memref<18x18x3xbf16, #tpu.memory_space<vmem>>, vector<16x16x3xbf16>
    tpu.vector_store %arg5[%c1, %c1_6, %c0_7], %1 {strides = array<i32>} : memref<18x18x3xbf16, #tpu.memory_space<vmem>>, vector<16x16x3xbf16>,
    %c0_8 = arith.constant 0 : index
    %c0_9 = arith.constant 0 : index
    %c0_10 = arith.constant 0 : index
    %5 = vector.load %arg5[%c0_8, %c0_9, %c0_10] : memref<18x18x3xbf16, #tpu.memory_space<vmem>>, vector<18x18x3xbf16>
    %6 = vector.extract_strided_slice %5 {offsets = [0, 0, 0], sizes = [16, 16, 3], strides = [1, 1, 1]} : vector<18x18x3xbf16> to vector<16x16x3xbf16>
    %7 = vector.extract_strided_slice %5 {offsets = [0, 1, 0], sizes = [16, 16, 3], strides = [1, 1, 1]} : vector<18x18x3xbf16> to vector<16x16x3xbf16>
    %8 = vector.extract_strided_slice %5 {offsets = [0, 2, 0], sizes = [16, 16, 3], strides = [1, 1, 1]} : vector<18x18x3xbf16> to vector<16x16x3xbf16>
    %9 = vector.extract_strided_slice %5 {offsets = [1, 0, 0], sizes = [16, 16, 3], strides = [1, 1, 1]} : vector<18x18x3xbf16> to vector<16x16x3xbf16>
    %10 = vector.extract_strided_slice %5 {offsets = [1, 1, 0], sizes = [16, 16, 3], strides = [1, 1, 1]} : vector<18x18x3xbf16> to vector<16x16x3xbf16>
    %11 = vector.extract_strided_slice %5 {offsets = [1, 2, 0], sizes = [16, 16, 3], strides = [1, 1, 1]} : vector<18x18x3xbf16> to vector<16x16x3xbf16>
    %12 = vector.extract_strided_slice %5 {offsets = [2, 0, 0], sizes = [16, 16, 3], strides = [1, 1, 1]} : vector<18x18x3xbf16> to vector<16x16x3xbf16>
    %13 = vector.extract_strided_slice %5 {offsets = [2, 1, 0], sizes = [16, 16, 3], strides = [1, 1, 1]} : vector<18x18x3xbf16> to vector<16x16x3xbf16>
    %14 = vector.extract_strided_slice %5 {offsets = [2, 2, 0], sizes = [16, 16, 3], strides = [1, 1, 1]} : vector<18x18x3xbf16> to vector<16x16x3xbf16>
    %15 = tpu.concatenate %6, %7, %8, %9, %10, %11, %12, %13, %14 in 2 : vector<16x16x3xbf16>, vector<16x16x3xbf16>, vector<16x16x3xbf16>, vector<16x16x3xbf16>, vector<16x16x3xbf16>, vector<16x16x3xbf16>, vector<16x16x3xbf16>, vector<16x16x3xbf16>, vector<16x16x3xbf16> -> vector<16x16x27xbf16>
    %16 = vector.shape_cast %15 : vector<16x16x27xbf16> to vector<256x27xbf16>
    %c0_11 = arith.constant 0 : index
    %c0_12 = arith.constant 0 : index
    %17 = vector.load %arg2[%c0_11, %c0_12] : memref<27x8xbf16, #tpu.memory_space<vmem>>, vector<27x8xbf16>
    %cst_13 = arith.constant dense<0.000000e+00> : vector<256x8xf32>
    %18 = tpu.matmul %16, %17, %cst_13 {dimension_numbers = #tpu.dot_dimension_numbers<[1], [0], [0], [1], [0, 0, 1, 1], [], []>} : vector<256x27xbf16>, vector<27x8xbf16>, vector<256x8xf32> -> vector<256x8xf32>
    %c0_14 = arith.constant 0 : index
    %c0_15 = arith.constant 0 : index
    %19 = vector.load %arg3[%c0_14, %c0_15] : memref<1x8xf32, #tpu.memory_space<vmem>>, vector<1x8xf32>
    %20 = vector.broadcast %19 : vector<1x8xf32> to vector<256x8xf32>
    %21 = arith.addf %18, %20 : vector<256x8xf32>
    %22 = vector.shape_cast %21 : vector<256x8xf32> to vector<16x16x8xf32>
    %23 = arith.truncf %22 : vector<16x16x8xf32> to vector<16x16x8xbf16>
    %c0_16 = arith.constant 0 : index
    %c0_17 = arith.constant 0 : index
    %c0_18 = arith.constant 0 : index
    %c0_19 = arith.constant 0 : index
    %24 = vector.load %arg4[%c0_16, %c0_17, %c0_18, %c0_19] : memref<1x16x16x8xbf16, #tpu.memory_space<vmem>>, vector<1x16x16x8xbf16>
    %25 = vector.shape_cast %24 : vector<1x16x16x8xbf16> to vector<16x16x8xbf16>
    %26 = vector.shape_cast %23 : vector<16x16x8xbf16> to vector<1x16x16x8xbf16>
    tpu.vector_store %arg4[%c0_16, %c0_17, %c0_18, %c0_19], %26 {strides = array<i32>} : memref<1x16x16x8xbf16, #tpu.memory_space<vmem>>, vector<1x16x16x8xbf16>,
    return
  }
  func.func @transform_0(%arg0: i32) -> (i32, i32, i32, i32) {
    %c0_i32 = arith.constant 0 : i32
    %c0_i32_0 = arith.constant 0 : i32
    %c0_i32_1 = arith.constant 0 : i32
    %c0_i32_2 = arith.constant 0 : i32
    return %arg0, %c0_i32, %c0_i32_0, %c0_i32_1 : i32, i32, i32, i32
  }
  func.func @transform_1(%arg0: i32) -> (i32, i32) {
    %c0_i32 = arith.constant 0 : i32
    %c0_i32_0 = arith.constant 0 : i32
    %c0_i32_1 = arith.constant 0 : i32
    return %c0_i32, %c0_i32_0 : i32, i32
  }
  func.func @transform_2(%arg0: i32) -> (i32, i32) {
    %c0_i32 = arith.constant 0 : i32
    %c0_i32_0 = arith.constant 0 : i32
    %c0_i32_1 = arith.constant 0 : i32
    return %c0_i32, %c0_i32_0 : i32, i32
  }
  func.func @transform_3(%arg0: i32) -> (i32, i32, i32, i32) {
    %c0_i32 = arith.constant 0 : i32
    %c0_i32_0 = arith.constant 0 : i32
    %c0_i32_1 = arith.constant 0 : i32
    %c0_i32_2 = arith.constant 0 : i32
    return %arg0, %c0_i32, %c0_i32_0, %c0_i32_1 : i32, i32, i32, i32
  }
}

</mosaic_0001>

<bundles_post_ra>
// kernel: tpu_custom_call.1
= control target key start
LH: loop header
LB: loop body
LE: loop exit
PB: predicated region body
PF: predicated region fallthrough
CT: control target
= control target key end

     0   :  { %s2422_s12 = smov 0   ;;  %s3481_s0 = inlined_call_operand.vmem [shape: bf16[2,16,16,3], index: 0, kind: input, shape index: {}]   ;;  %s3482_s1 = inlined_call_operand.vmem [shape: bf16[27,8], index: 1, kind: input, shape index: {}]   ;;  %s3483_s2 = inlined_call_operand.vmem [shape: f32[1,8], index: 2, kind: input, shape index: {}]   ;;  %s3484_s3 = inlined_call_operand.vmem [shape: bf16[2,16,16,8], index: 3, kind: output, shape index: {}]  }
   0x1 LB: > { %s2130_s13 = sadd.s32 4294967295, %s2390_s12   ;;  %p2134_p0 = scmp.ge.s32.totalorder %s2390_s12, 1  ;;  %s2390_s12 = sphi %s2422_s12, %s13_s12  }
   0x2   : > { %p137_p1 = scmp.lt.s32.totalorder %s2390_s12, 3 }
   0x4   : > { %p138_p2 = pnand %p2134_p0, %p137_p1 }
   0x5   : > { %vm204_vm0 = vcmask (!%p138_p2), 19456   ;;  %vm207_vm1 = vcmask (!%p138_p2), 16384   ;;  %v2392_v0 = vmov (!%p138_p2), 0   ;;  %p161_p3 = scmp.lt.s32.totalorder (!%p138_p2), %s2130_s13, 1  ;;  %vm883_vm2 = vsmask.f32 (!%p138_p2), 7424 }
   0x6   : > { %141 = sbr.rel (%p138_p2) target bundleno = 641 (0x281), region = 32  ;;  %205 = vst.msk [vmem:[#allocation2] sm:$0xf] (!%p138_p2), %vm204_vm0, %v2392_v0  ;;  %206 = vst.msk [vmem:[#allocation2 + $0x4] sm:$0xf] (!%p138_p2), %vm204_vm0, %v2392_v0  ;;  %vm1108_vm6 = vcmask (!%p138_p2), 1046528  }
   0x7   : > { %208 = vst.msk [vmem:[#allocation2 + $0x8] sm:$0x1] (!%p138_p2), %vm207_vm1, %v2392_v0  ;;  %211 = vst.msk [vmem:[#allocation2 + $0x14] sm:$0x1] (!%p138_p2), %vm207_vm1, %v2392_v0  ;;  %vm260_vm3 = vsmask.f32 (!%p138_p2), 256 }
   0x8   : > { %209 = vst.msk [vmem:[#allocation2 + $0xc] sm:$0xf] (!%p138_p2), %vm204_vm0, %v2392_v0  ;;  %210 = vst.msk [vmem:[#allocation2 + $0x10] sm:$0xf] (!%p138_p2), %vm204_vm0, %v2392_v0  ;;  %vm261_vm4 = vsmask.f32 (!%p138_p2), 4368 }
   0x9   : > { %212 = vst.msk [vmem:[#allocation2 + $0x18] sm:$0xf] (!%p138_p2), %vm204_vm0, %v2392_v0  ;;  %213 = vst.msk [vmem:[#allocation2 + $0x1c] sm:$0xf] (!%p138_p2), %vm204_vm0, %v2392_v0  ;;  %vm585_vm5 = vsmask.f32 (!%p138_p2), 7938 }
   0xa   : > { %214 = vst.msk [vmem:[#allocation2 + $0x20] sm:$0x1] (!%p138_p2), %vm207_vm1, %v2392_v0  ;;  %217 = vst.msk [vmem:[#allocation2 + $0x2c] sm:$0x1] (!%p138_p2), %vm207_vm1, %v2392_v0  ;;  %s2393_s18 = smov (!%p138_p2), 6   ;;  %s2394_s19 = smov (!%p138_p2), 3  }
   0xb   : > { %215 = vst.msk [vmem:[#allocation2 + $0x24] sm:$0xf] (!%p138_p2), %vm204_vm0, %v2392_v0  ;;  %216 = vst.msk [vmem:[#allocation2 + $0x28] sm:$0xf] (!%p138_p2), %vm204_vm0, %v2392_v0  ;;  %s2395_s20 = smov (!%p138_p2), 9   ;;  %s2396_s21 = smov (!%p138_p2), 12  }
   0xc   : > { %218 = vst.msk [vmem:[#allocation2 + $0x30] sm:$0xf] (!%p138_p2), %vm204_vm0, %v2392_v0  ;;  %219 = vst.msk [vmem:[#allocation2 + $0x34] sm:$0xf] (!%p138_p2), %vm204_vm0, %v2392_v0  ;;  %s2397_s22 = smov (!%p138_p2), 15   ;;  %s2398_s23 = smov (!%p138_p2), 18  }
   0xd   : > { %220 = vst.msk [vmem:[#allocation2 + $0x38] sm:$0x1] %vm207_vm1, %v2392_v0  ;;  %223 = vst.msk [vmem:[#allocation2 + $0x44] sm:$0x1] %vm207_vm1, %v2392_v0  ;;  %s3492_s13 = smov (!%p161_p3, %s2130_s13), 1  ;;  %v2338_v4 = vld [vmem:[#allocation2] sm:$0xff]  }
   0xe   : > { %221 = vst.msk [vmem:[#allocation2 + $0x3c] sm:$0xf] %vm204_vm0, %v2392_v0  ;;  %222 = vst.msk [vmem:[#allocation2 + $0x40] sm:$0xf] %vm204_vm0, %v2392_v0  ;;  %s2228_s14 = sshll.u32 %s3492_s13, 7  ;;  %v1109_v11 = vrot.slane %v2338_v4, 1 }
   0xf   : > { %224 = vst.msk [vmem:[#allocation2 + $0x48] sm:$0xf] %vm204_vm0, %v2392_v0  ;;  %225 = vst.msk [vmem:[#allocation2 + $0x4c] sm:$0xf] %vm204_vm0, %v2392_v0  ;;  %s2496_s17 = scalar_lea.vmem %s3481_s0, %s2228_s14  ;;  %v885_v13 = vshrl.u32 %v2338_v4, 16  ;;  %v887_v14 = vshll.u32 %v2338_v4, 16  ;;  %s3381_s7 = scalar_lea.vmem %s3484_s3, %s2228_s14 }
  0x10   : > { %226 = vst.msk [vmem:[#allocation2 + $0x50] sm:$0x1] %vm207_vm1, %v2392_v0  ;;  %229 = vst.msk [vmem:[#allocation2 + $0x5c] sm:$0x1] %vm207_vm1, %v2392_v0  ;;  %v188_v1 = vld [vmem:[%s2496_s17 + $0x40] sm:$0xf] }
  0x11   : > { %227 = vst.msk [vmem:[#allocation2 + $0x54] sm:$0xf] %vm204_vm0, %v2392_v0  ;;  %228 = vst.msk [vmem:[#allocation2 + $0x58] sm:$0xf] %vm204_vm0, %v2392_v0  ;;  %v189_v2 = vld [vmem:[%s2496_s17 + $0x44] sm:$0xf] }
  0x12   : > { %230 = vst.msk [vmem:[#allocation2 + $0x60] sm:$0xf] %vm204_vm0, %v2392_v0  ;;  %231 = vst.msk [vmem:[#allocation2 + $0x64] sm:$0xf] %vm204_vm0, %v2392_v0  ;;  %v172_v3 = vld [vmem:[%s2496_s17] sm:$0xf] }
  0x13   : > { %232 = vst.msk [vmem:[#allocation2 + $0x68] sm:$0x1] %vm207_vm1, %v2392_v0  ;;  %235 = vst.msk [vmem:[#allocation2 + $0x74] sm:$0x1] %vm207_vm1, %v2392_v0  ;;  %v400_v6 = vshrl.u32 %v188_v1, 16  ;;  %v403_v7 = vshll.u32 %v188_v1, 16 }
  0x14   : > { %233 = vst.msk [vmem:[#allocation2 + $0x6c] sm:$0xf] %vm204_vm0, %v2392_v0  ;;  %234 = vst.msk [vmem:[#allocation2 + $0x70] sm:$0xf] %vm204_vm0, %v2392_v0  ;;  %v408_v8 = vshrl.u32 %v189_v2, 16  ;;  %v411_v9 = vshll.u32 %v189_v2, 16 }
  0x15   : > { %236 = vst.msk [vmem:[#allocation2 + $0x78] sm:$0xf] %vm204_vm0, %v2392_v0  ;;  %237 = vst.msk [vmem:[#allocation2 + $0x7c] sm:$0xf] %vm204_vm0, %v2392_v0  ;;  %v173_v10 = vld [vmem:[%s2496_s17 + $0x4] sm:$0xf] }
  0x16   : > { %238 = vst.msk [vmem:[#allocation2 + $0x80] sm:$0x1] %vm207_vm1, %v2392_v0  ;;  %241 = vst.msk [vmem:[#allocation2 + $0x8c] sm:$0x1] %vm207_vm1, %v2392_v0  ;;  %v402_v17 = vrot.slane %v400_v6, 7  ;;  %v2508_v18 = vrot.slane %v408_v8, 7 }
  0x17   : > { %239 = vst.msk [vmem:[#allocation2 + $0x84] sm:$0xf] %vm204_vm0, %v2392_v0  ;;  %240 = vst.msk [vmem:[#allocation2 + $0x88] sm:$0xf] %vm204_vm0, %v2392_v0  ;;  %v264_v20 = vshrl.u32 %v172_v3, 16  ;;  %v889_v22 = vrot.slane %v887_v14, 1 }
  0x18   : > { %242 = vst.msk [vmem:[#allocation2 + $0x90] sm:$0xf] %vm204_vm0, %v2392_v0  ;;  %243 = vst.msk [vmem:[#allocation2 + $0x94] sm:$0xf] %vm204_vm0, %v2392_v0  ;;  %v267_v24 = vshll.u32 %v172_v3, 16  ;;  %v272_v25 = vshrl.u32 %v173_v10, 16  ;;  %v405_v28 = vor.u32 %v403_v7, %v402_v17  ;;  %v413_v30 = vor.u32 %v411_v9, %v2508_v18 }
  0x19   : > { %244 = vst.msk [vmem:[#allocation2 + $0x98] sm:$0x1] %vm207_vm1, %v2392_v0  ;;  %247 = vst.msk [vmem:[#allocation2 + $0xa4] sm:$0x1] %vm207_vm1, %v2392_v0  ;;  %v190_v26 = vld [vmem:[%s2496_s17 + $0x48] sm:$0xf]  ;;  %v890_v32 = vor.u32 %v889_v22, %v885_v13 }
  0x1a   : > { %245 = vst.msk [vmem:[#allocation2 + $0x9c] sm:$0xf] %vm204_vm0, %v2392_v0  ;;  %246 = vst.msk [vmem:[#allocation2 + $0xa0] sm:$0xf] %vm204_vm0, %v2392_v0  ;;  %v406_v29 = vrot.slane %v402_v17, 4  ;;  %v266_v33 = vrot.slane %v264_v20, 7 }
  0x1b   : > { %248 = vst.msk [vmem:[#allocation2 + $0xa8] sm:$0xf] %vm204_vm0, %v2392_v0  ;;  %249 = vst.msk [vmem:[#allocation2 + $0xac] sm:$0xf] %vm204_vm0, %v2392_v0  ;;  %v645_v19 = vld [vmem:[#allocation2 + $0x6c] sm:$0xf] }
  0x1c   : > { %250 = vst.msk [vmem:[#allocation2 + $0xb0] sm:$0x1] %vm207_vm1, %v2392_v0  ;;  %253 = vst.msk [vmem:[#allocation2 + $0xbc] sm:$0x1] %vm207_vm1, %v2392_v0  ;;  %v191_v31 = vld [vmem:[%s2496_s17 + $0x4c] sm:$0xf]  ;;  %v269_v44 = vor.u32 %v267_v24, %v266_v33 }
  0x1d   : > { %251 = vst.msk [vmem:[#allocation2 + $0xb4] sm:$0xf] %vm204_vm0, %v2392_v0  ;;  %252 = vst.msk [vmem:[#allocation2 + $0xb8] sm:$0xf] %vm204_vm0, %v2392_v0  ;;  %v2521_v34 = vrot.slane %v272_v25, 7  ;;  %v275_v35 = vshll.u32 %v173_v10, 16 }
  0x1e   : > { %254 = vst.msk [vmem:[#allocation2 + $0xc0] sm:$0xf] %vm204_vm0, %v2392_v0  ;;  %255 = vst.msk [vmem:[#allocation2 + $0xc4] sm:$0xf] %vm204_vm0, %v2392_v0  ;;  %v174_v36 = vld [vmem:[%s2496_s17 + $0x8] sm:$0xf] }
  0x1f   : > { %256 = vst.msk [vmem:[#allocation2 + $0xc8] sm:$0x1] %vm207_vm1, %v2392_v0  ;;  %259 = vst.msk [vmem:[#allocation2 + $0xd4] sm:$0x1] %vm207_vm1, %v2392_v0  ;;  %v587_v39 = vld [vmem:[#allocation2 + $0xc] sm:$0xf]  ;;  %v277_v46 = vor.u32 %v275_v35, %v2521_v34 }
  0x20   : > { %257 = vst.msk [vmem:[#allocation2 + $0xcc] sm:$0xf] %vm204_vm0, %v2392_v0  ;;  %258 = vst.msk [vmem:[#allocation2 + $0xd0] sm:$0xf] %vm204_vm0, %v2392_v0  ;;  %v417_v40 = vshrl.u32 %v190_v26, 16  ;;  %v420_v41 = vshll.u32 %v190_v26, 16 }
  0x21   : > { %v2339_v5 = vld [vmem:[#allocation2 + $0x8] ss:$0 sps:$4 sm:$0x11]   ;;  %vm2504_vm7 = vmor %vm260_vm3, %vm261_vm4  ;;  %v175_v42 = vld [vmem:[%s2496_s17 + $0xc] sm:$0xf]  ;;  %v270_v45 = vrot.slane %v266_v33, 4 }
  0x22   : > { %v1110_v12 = vrot.slane %v2339_v5, 1  ;;  %v892_v15 = vshll.u32 %v2339_v5, 16  ;;  %vm2513_vm8 = vmand %vm204_vm0, %vm585_vm5  ;;  %v414_v37 = vsel %vm2504_vm7, %v406_v29, %v413_v30  ;;  %v419_v47 = vrot.slane %v417_v40, 7  ;;  %v186_v51 = vld [vmem:[%s2496_s17 + $0x38] sm:$0xf]  ;;  %s2399_s26 = smov 21  }
  0x23   : > { %v646_v38 = vsel %vm2513_vm8, %v405_v28, %v645_v19  ;;  %648 = vst.msk [vmem:[#allocation2 + $0x70] sm:$0xf] %vm204_vm0, %v414_v37  ;;  %v425_v48 = vshrl.u32 %v191_v31, 16  ;;  %v428_v49 = vshll.u32 %v191_v31, 16  ;;  %v281_v50 = vshrl.u32 %v174_v36, 16  ;;  %vm2547_vm9 = vmand %vm207_vm1, %vm260_vm3  ;;  %s2400_s27 = smov 24  }
  0x24   : > { %v1111_v21 = vsel %vm1108_vm6, %v1109_v11, %v1110_v12  ;;  %v894_v27 = vrot.slane %v892_v15, 1  ;;  %647 = vst [vmem:[#allocation2 + $0x6c] sm:$0xf] %v646_v38  ;;  %v278_v52 = vsel %vm2504_vm7, %v270_v45, %v277_v46  ;;  %v588_v53 = vsel %vm2513_vm8, %v269_v44, %v587_v39  ;;  %v652_v54 = vld [vmem:[#allocation2 + $0x78] sm:$0xf] }
  0x25   : > { %1157 = vrot.lane.b32.xlu0 %v1111_v21, %s2393_s18  ;;  %v284_v55 = vshll.u32 %v174_v36, 16  ;;  %v289_v56 = vshrl.u32 %v175_v42, 16  ;;  %589 = vst [vmem:[#allocation2 + $0xc] sm:$0xf] %v588_v53  ;;  %590 = vst.msk [vmem:[#allocation2 + $0x10] sm:$0xf] %vm204_vm0, %v278_v52  ;;  %v422_v57 = vor.u32 %v420_v41, %v419_v47 }
  0x26   : > { %v895_v43 = vsel %vm883_vm2, %v890_v32, %v894_v27  ;;  %v423_v58 = vrot.slane %v419_v47, 4  ;;  %v2539_v59 = vrot.slane %v425_v48, 7  ;;  %v283_v60 = vrot.slane %v281_v50, 7  ;;  %v187_v61 = vld [vmem:[%s2496_s17 + $0x3c] sm:$0xf] }
  0x27   : > { %v291_v62 = vrot.slane %v289_v56, 7  ;;  %v292_v63 = vshll.u32 %v175_v42, 16  ;;  %v596_v0 = vld [vmem:[#allocation2 + $0x18] sm:$0xf]  ;;  %v383_v1 = vshrl.u32 %v186_v51, 16  ;;  %v386_v2 = vshll.u32 %v186_v51, 16 }
  0x28   : > { %v430_v3 = vor.u32 %v428_v49, %v2539_v59  ;;  %v653_v4 = vsel %vm2513_vm8, %v422_v57, %v652_v54  ;;  %v286_v5 = vor.u32 %v284_v55, %v283_v60  ;;  %v287_v6 = vrot.slane %v283_v60, 4  ;;  %v638_v7 = vld [vmem:[#allocation2 + $0x60] sm:$0xf]  ;;  %v593_v13 = vld [vmem:[#allocation2 + $0x14] sm:$0x1] }
  0x29   : > { %1076 = vrot.lane.b32.xlu0 %v895_v43, %s2394_s19  ;;  %654 = vst [vmem:[#allocation2 + $0x78] sm:$0xf] %v653_v4  ;;  %v294_v8 = vor.u32 %v292_v63, %v291_v62  ;;  %v385_v9 = vrot.slane %v383_v1, 7  ;;  %v391_v10 = vshrl.u32 %v187_v61, 16  ;;  %v394_v11 = vshll.u32 %v187_v61, 16 }
  0x2a   : > { %v431_v15 = vsel %vm2504_vm7, %v423_v58, %v430_v3  ;;  %v597_v17 = vsel %vm2513_vm8, %v286_v5, %v596_v0  ;;  %v279_v19 = vrot.slane %v2521_v34, 4  ;;  %v649_v25 = vld [vmem:[#allocation2 + $0x74] sm:$0x1]  ;;  %v600_v26 = vld [vmem:[#allocation2 + $0x20] sm:$0x1]  ;;  %v415_v29 = vrot.slane %v2508_v18, 4 }
  0x2b   : > { %v2551_v14 = vld [vmem:[#allocation2 + $0x6c] sm:$0xff]   ;;  %655 = vst.msk [vmem:[#allocation2 + $0x7c] sm:$0xf] %vm204_vm0, %v431_v15  ;;  %v295_v20 = vsel %vm2504_vm7, %v287_v6, %v294_v8  ;;  %598 = vst [vmem:[#allocation2 + $0x18] sm:$0xf] %v597_v17  ;;  %v388_v21 = vor.u32 %v386_v2, %v385_v9  ;;  %v389_v22 = vrot.slane %v385_v9, 4 }
  0x2c   : > { %v393_v24 = vrot.slane %v391_v10, 7  ;;  %1210 = vrot.lane.b32.xlu1 %v2551_v14, %s2395_s20  ;;  %599 = vst.msk [vmem:[#allocation2 + $0x1c] sm:$0xf] %vm204_vm0, %v295_v20  ;;  %v642_v27 = vld [vmem:[#allocation2 + $0x68] sm:$0x1]  ;;  %v594_v28 = vsel %vm2547_vm9, %v279_v19, %v593_v13  ;;  %v296_v30 = vrot.slane %v291_v62, 4  ;;  %v650_v36 = vsel %vm2547_vm9, %v415_v29, %v649_v25 }
  0x2d   : > { %v176_v31 = vld [vmem:[%s2496_s17 + $0x10] sm:$0xf]  ;;  %v639_v35 = vsel %vm2513_vm8, %v388_v21, %v638_v7  ;;  %595 = vst [vmem:[#allocation2 + $0x14] sm:$0x1] %v594_v28  ;;  %v2575_v38 = vld [vmem:[%s2496_s17 + $0x14] sm:$0xf] }
  0x2e   : > { %v2341_v32 = vld [vmem:[#allocation2 + $0xc] sm:$0xff]   ;;  %v396_v33 = vor.u32 %v394_v11, %v393_v24  ;;  %v398_v34 = vrot.slane %v393_v24, 4  ;;  %640 = vst [vmem:[#allocation2 + $0x60] sm:$0xf] %v639_v35  ;;  %v601_v37 = vsel %vm2547_vm9, %v296_v30, %v600_v26  ;;  %651 = vst [vmem:[#allocation2 + $0x74] sm:$0x1] %v650_v36 }
  0x2f   : > { %1194 = vrot.lane.b32.xlu0 %v2341_v32, %s2395_s20  ;;  %602 = vst [vmem:[#allocation2 + $0x20] sm:$0x1] %v601_v37  ;;  %v995_v40 = vshll.u32 %v2551_v14, 16  ;;  %v656_v41 = vld [vmem:[#allocation2 + $0x80] sm:$0x1]  ;;  %v1136_v42 = vrot.slane %v2551_v14, 1 }
  0x30   : > { %v397_v18 = vsel %vm2504_vm7, %v389_v22, %v396_v33  ;;  %v643_v39 = vsel %vm2547_vm9, %v398_v34, %v642_v27  ;;  %v432_v43 = vrot.slane %v2539_v59, 4  ;;  %v298_v44 = vshrl.u32 %v176_v31, 16  ;;  %v2589_v49 = vld [vmem:[%s2496_s17 + $0x50] sm:$0xf]  ;;  %v603_v57 = vld [vmem:[#allocation2 + $0x24] sm:$0xf] }
  0x31   : > { %641 = vst.msk [vmem:[#allocation2 + $0x64] sm:$0xf] %vm204_vm0, %v397_v18  ;;  %644 = vst [vmem:[#allocation2 + $0x68] sm:$0x1] %v643_v39  ;;  %v1112_v45 = vrot.slane %v2341_v32, 1  ;;  %v899_v46 = vshll.u32 %v2341_v32, 16 }
  0x32   : > { %v993_v47 = vshrl.u32 %v2551_v14, 16  ;;  %v306_v48 = vshrl.u32 %v2575_v38, 16  ;;  %v2591_v50 = vld [vmem:[#allocation2 + $0x78] sm:$0xff]   ;;  %v657_v51 = vsel %vm2547_vm9, %v432_v43, %v656_v41  ;;  %v301_v52 = vshll.u32 %v176_v31, 16  ;;  %v607_v35 = vld [vmem:[#allocation2 + $0x2c] sm:$0x1] }
  0x33   : > { %v2595_v53 = vld [vmem:[#allocation2 + $0x18] sm:$0xff]   ;;  %v897_v54 = vshrl.u32 %v2341_v32, 16  ;;  %v997_v55 = vrot.slane %v995_v40, 1  ;;  %658 = vst [vmem:[#allocation2 + $0x80] sm:$0x1] %v657_v51  ;;  %v300_v56 = vrot.slane %v298_v44, 7  ;;  %1212 = vrot.lane.b32.xlu1 %v2591_v50, %s2395_s20 }
  0x34   : > { %v2346_v58 = vld [vmem:[#allocation2 + $0x14] ss:$0 sps:$4 sm:$0x11]   ;;  %v309_v59 = vshll.u32 %v2575_v38, 16  ;;  %1196 = vrot.lane.b32.xlu0 %v2595_v53, %s2395_s20  ;;  %v901_v60 = vrot.slane %v899_v46, 1  ;;  %v911_v61 = vshll.u32 %v2595_v53, 16 }
  0x35   : > { %v2603_v62 = vrot.slane %v306_v48, 7  ;;  %v434_v63 = vshrl.u32 %v2589_v49, 16  ;;  %v1113_v0 = vrot.slane %v2346_v58, 1  ;;  %v2347_v1 = vld [vmem:[#allocation2 + $0x74] ss:$0 sps:$4 sm:$0x11]   ;;  %v303_v2 = vor.u32 %v301_v52, %v300_v56 }
  0x36   : > { %v904_v4 = vshll.u32 %v2346_v58, 16  ;;  %v909_v7 = vshrl.u32 %v2595_v53, 16  ;;  %v998_v8 = vor.u32 %v997_v55, %v993_v47  ;;  %v1137_v11 = vrot.slane %v2347_v1, 1  ;;  %v2614_v20 = vld [vmem:[#allocation2 + $0x20] ss:$0 sps:$4 sm:$0x11]  }
  0x37   : > { %v2607_v6 = vsel %vm1108_vm6, %v1112_v45, %v1113_v0  ;;  %v604_v9 = vsel %vm2513_vm8, %v303_v2, %v603_v57  ;;  %v902_v19 = vor.u32 %v901_v60, %v897_v54  ;;  %v913_v21 = vrot.slane %v911_v61, 1  ;;  %v193_v40 = vld [vmem:[%s2496_s17 + $0x54] sm:$0xf]  ;;  %v178_v46 = vld [vmem:[%s2496_s17 + $0x18] sm:$0xf] }
  0x38   : > { %v2344_v3 = vld [vmem:[#allocation2 + $0x60] sm:$0xff]   ;;  %v2345_v5 = vld [vmem:[#allocation2 + $0x68] ss:$0 sps:$4 sm:$0x11]   ;;  %1159 = vrot.lane.b32.xlu0 %v2607_v6, %s2393_s18  ;;  %605 = vst [vmem:[#allocation2 + $0x24] sm:$0xf] %v604_v9  ;;  %v311_v31 = vor.u32 %v309_v59, %v2603_v62  ;;  %v2627_v37 = vsel %vm1108_vm6, %v1136_v42, %v1137_v11 }
  0x39   : > { %v1133_v10 = vrot.slane %v2344_v3, 1  ;;  %v981_v13 = vshrl.u32 %v2344_v3, 16  ;;  %v983_v14 = vshll.u32 %v2344_v3, 16  ;;  %v1134_v15 = vrot.slane %v2345_v5, 1  ;;  %v179_v47 = vld [vmem:[%s2496_s17 + $0x1c] sm:$0xf] }
  0x3a   : > { %v988_v17 = vshll.u32 %v2345_v5, 16  ;;  %v906_v24 = vrot.slane %v904_v4, 1  ;;  %v1000_v25 = vshll.u32 %v2347_v1, 16  ;;  %v1007_v26 = vshll.u32 %v2591_v50, 16  ;;  %v194_v58 = vld [vmem:[%s2496_s17 + $0x58] sm:$0xf] }
  0x3b   : > { %v985_v22 = vrot.slane %v983_v14, 1  ;;  %v2618_v27 = vsel %vm1108_vm6, %v1133_v10, %v1134_v15  ;;  %v916_v29 = vshll.u32 %v2614_v20, 16  ;;  %v2621_v30 = vld [vmem:[#allocation2 + $0x80] ss:$0 sps:$4 sm:$0x11]   ;;  %v914_v33 = vor.u32 %v913_v21, %v909_v7 }
  0x3c   : > { %v990_v28 = vrot.slane %v988_v17, 1  ;;  %1173 = vrot.lane.b32.xlu1 %v2618_v27, %s2393_s18  ;;  %v1002_v34 = vrot.slane %v1000_v25, 1  ;;  %v436_v36 = vrot.slane %v434_v63, 7  ;;  %v1005_v18 = vshrl.u32 %v2591_v50, 16  ;;  %v195_v4 = vld [vmem:[%s2496_s17 + $0x5c] sm:$0xf] }
  0x3d   : > { %v986_v32 = vor.u32 %v985_v22, %v981_v13  ;;  %v918_v38 = vrot.slane %v916_v29, 1  ;;  %v304_v39 = vrot.slane %v300_v56, 4  ;;  %v907_v43 = vsel %vm883_vm2, %v902_v19, %v906_v24  ;;  %v663_v5 = vld [vmem:[#allocation2 + $0x8c] sm:$0x1]  ;;  %v610_v15 = vld [vmem:[#allocation2 + $0x30] sm:$0xf] }
  0x3e   : > { %v1115_v44 = vrot.slane %v2595_v53, 1  ;;  %v2636_v45 = vrot.slane %v1007_v26, 1  ;;  %v1116_v42 = vrot.slane %v2614_v20, 1  ;;  %v1012_v48 = vshll.u32 %v2621_v30, 16  ;;  %v614_v17 = vld [vmem:[#allocation2 + $0x38] sm:$0x1] }
  0x3f   : > { %v2632_v41 = vsel %vm883_vm2, %v986_v32, %v990_v28  ;;  %v312_v51 = vsel %vm2504_vm7, %v304_v39, %v311_v31  ;;  %v313_v52 = vrot.slane %v2603_v62, 4  ;;  %v2650_v54 = vsel %vm883_vm2, %v914_v33, %v918_v38  ;;  %v659_v62 = vld [vmem:[#allocation2 + $0x84] sm:$0xf]  ;;  %v180_v25 = vld [vmem:[%s2496_s17 + $0x20] sm:$0xf] }
  0x40   : > { %1092 = vrot.lane.b32.xlu0 %v2632_v41, %s2394_s19  ;;  %1175 = vrot.lane.b32.xlu1 %v2627_v37, %s2393_s18  ;;  %v2653_v55 = vsel %vm883_vm2, %v998_v8, %v1002_v34  ;;  %606 = vst.msk [vmem:[#allocation2 + $0x28] sm:$0xf] %vm204_vm0, %v312_v51  ;;  %v437_v56 = vshll.u32 %v2589_v49, 16  ;;  %v442_v57 = vshrl.u32 %v193_v40, 16  ;;  %v440_v60 = vrot.slane %v436_v36, 4 }
  0x41   : > { %v608_v59 = vsel %vm2547_vm9, %v313_v52, %v607_v35  ;;  %v445_v61 = vshll.u32 %v193_v40, 16  ;;  %v315_v63 = vshrl.u32 %v178_v46, 16  ;;  %v318_v2 = vshll.u32 %v178_v46, 16  ;;  %v666_v32 = vld [vmem:[#allocation2 + $0x90] sm:$0xf] }
  0x42   : > { %609 = vst [vmem:[#allocation2 + $0x2c] sm:$0x1] %v608_v59  ;;  %v439_v0 = vor.u32 %v437_v56, %v436_v36  ;;  %v444_v1 = vrot.slane %v442_v57, 7  ;;  %v323_v3 = vshrl.u32 %v179_v47, 16  ;;  %v326_v7 = vshll.u32 %v179_v47, 16 }
  0x43   : > { %v317_v49 = vrot.slane %v315_v63, 7  ;;  %v451_v8 = vshrl.u32 %v194_v58, 16  ;;  %v454_v9 = vshll.u32 %v194_v58, 16  ;;  %v459_v24 = vshrl.u32 %v195_v4, 16  ;;  %v181_v56 = vld [vmem:[%s2496_s17 + $0x24] sm:$0xf] }
  0x44   : > { %1241 = vrot.lane.b32.xlu0 %v907_v43, %s2396_s21  ;;  %1078 = vrot.lane.b32.xlu1 %v907_v43, %s2394_s19  ;;  %v447_v10 = vor.u32 %v445_v61, %v444_v1  ;;  %v660_v11 = vsel %vm2513_vm8, %v439_v0, %v659_v62  ;;  %v449_v13 = vrot.slane %v444_v1, 4  ;;  %v325_v14 = vrot.slane %v323_v3, 7  ;;  %v670_v43 = vld [vmem:[#allocation2 + $0x98] sm:$0x1]  ;;  %v617_v62 = vld [vmem:[#allocation2 + $0x3c] sm:$0xf] }
  0x45   : > { %661 = vst [vmem:[#allocation2 + $0x84] sm:$0xf] %v660_v11  ;;  %v320_v19 = vor.u32 %v318_v2, %v317_v49  ;;  %v321_v21 = vrot.slane %v317_v49, 4  ;;  %v453_v22 = vrot.slane %v451_v8, 7  ;;  %v461_v36 = vrot.slane %v459_v24, 7 }
  0x46   : > { %v448_v26 = vsel %vm2504_vm7, %v440_v60, %v447_v10  ;;  %v664_v28 = vsel %vm2547_vm9, %v449_v13, %v663_v5  ;;  %v328_v29 = vor.u32 %v326_v7, %v325_v14  ;;  %v330_v31 = vrot.slane %v325_v14, 4  ;;  %v196_v14 = vld [vmem:[%s2496_s17 + $0x60] sm:$0xf] }
  0x47   : > { %662 = vst.msk [vmem:[#allocation2 + $0x88] sm:$0xf] %vm204_vm0, %v448_v26  ;;  %665 = vst [vmem:[#allocation2 + $0x8c] sm:$0x1] %v664_v28  ;;  %v611_v33 = vsel %vm2513_vm8, %v320_v19, %v610_v15  ;;  %v456_v34 = vor.u32 %v454_v9, %v453_v22  ;;  %v457_v35 = vrot.slane %v453_v22, 4  ;;  %v462_v40 = vshll.u32 %v195_v4, 16 }
  0x48   : > { %1243 = vrot.lane.b32.xlu0 %v2650_v54, %s2396_s21  ;;  %1094 = vrot.lane.b32.xlu1 %v2653_v55, %s2394_s19  ;;  %v329_v38 = vsel %vm2504_vm7, %v321_v21, %v328_v29  ;;  %612 = vst [vmem:[#allocation2 + $0x30] sm:$0xf] %v611_v33  ;;  %v615_v39 = vsel %vm2547_vm9, %v330_v31, %v614_v17  ;;  %v332_v46 = vshrl.u32 %v180_v25, 16  ;;  %v1014_v51 = vrot.slane %v1012_v48, 1  ;;  %v2690_v59 = vld [vmem:[#allocation2 + $0x24] sm:$0xff]  }
  0x49   : > { %v1010_v47 = vor.u32 %v2636_v45, %v1005_v18  ;;  %613 = vst.msk [vmem:[#allocation2 + $0x34] sm:$0xf] %vm204_vm0, %v329_v38  ;;  %616 = vst [vmem:[#allocation2 + $0x38] sm:$0x1] %v615_v39  ;;  %v667_v52 = vsel %vm2513_vm8, %v456_v34, %v666_v32  ;;  %v464_v57 = vor.u32 %v462_v40, %v461_v36  ;;  %v466_v58 = vrot.slane %v461_v36, 4  ;;  %v2366_v17 = vld [vmem:[%s3482_s1] sm:$0xff]  }
  0x4a   : > { %668 = vst [vmem:[#allocation2 + $0x90] sm:$0xf] %v667_v52  ;;  %v334_v60 = vrot.slane %v332_v46, 7  ;;  %v335_v61 = vshll.u32 %v180_v25, 16  ;;  %v2699_v18 = vsel %vm1108_vm6, %v1115_v44, %v1116_v42  ;;  %v340_v48 = vshrl.u32 %v181_v56, 16  ;;  %2280 = vmatprep.subr.bf16.mxu0 %v2366_v17  ;;  %2316 = vmatprep.subr.bf16.mxu1 %v2366_v17 }
  0x4b   : > { %v465_v45 = vsel %vm2504_vm7, %v457_v35, %v464_v57  ;;  %v2706_v63 = vsel %vm883_vm2, %v1010_v47, %v1014_v51  ;;  %v2708_v0 = vld [vmem:[#allocation2 + $0x2c] ss:$0 sps:$4 sm:$0x11]   ;;  %v923_v44 = vshll.u32 %v2690_v59, 16  ;;  %v343_v2 = vshll.u32 %v181_v56, 16  ;;  %2281 = vmatpush3.bf16.msra.mxu0 %v2366_v17  ;;  %2318 = vmatpush3.bf16.msra.mxu1 %v2366_v17 }
  0x4c   : > { %1276 = vrot.lane.b32.xlu0 %v2607_v6, %s2397_s22  ;;  %1257 = vrot.lane.b32.xlu1 %v2653_v55, %s2396_s21  ;;  %v671_v6 = vsel %vm2547_vm9, %v466_v58, %v670_v43  ;;  %669 = vst.msk [vmem:[#allocation2 + $0x94] sm:$0xf] %vm204_vm0, %v465_v45  ;;  %v337_v20 = vor.u32 %v335_v61, %v334_v60  ;;  %v342_v1 = vrot.slane %v340_v48, 7  ;;  %v338_v42 = vrot.slane %v334_v60, 4  ;;  %v197_v15 = vld [vmem:[%s2496_s17 + $0x64] sm:$0xf] }
  0x4d   : > { %672 = vst [vmem:[#allocation2 + $0x98] sm:$0x1] %v671_v6  ;;  %v1139_v4 = vrot.slane %v2591_v50, 1  ;;  %v1140_v5 = vrot.slane %v2621_v30, 1  ;;  %v921_v7 = vshrl.u32 %v2690_v59, 16  ;;  %v925_v8 = vrot.slane %v923_v44, 1 }
  0x4e   : > { %v618_v3 = vsel %vm2513_vm8, %v337_v20, %v617_v62  ;;  %v345_v49 = vor.u32 %v343_v2, %v342_v1  ;;  %v928_v9 = vshll.u32 %v2708_v0, 16  ;;  %v2728_v11 = vld [vmem:[#allocation2 + $0x84] sm:$0xff]   ;;  %v2743_v22 = vld [vmem:[#allocation2 + $0x8c] ss:$0 sps:$4 sm:$0x11]   ;;  %v468_v26 = vshrl.u32 %v196_v14, 16 }
  0x4f   : > { %619 = vst [vmem:[#allocation2 + $0x3c] sm:$0xf] %v618_v3  ;;  %v621_v30 = vld [vmem:[#allocation2 + $0x44] sm:$0x1]  ;;  %v2732_v13 = vsel %vm1108_vm6, %v1139_v4, %v1140_v5  ;;  %v926_v19 = vor.u32 %v925_v8, %v921_v7  ;;  %v1019_v24 = vshll.u32 %v2728_v11, 16  ;;  %v471_v28 = vshll.u32 %v196_v14, 16 }
  0x50   : > { %1278 = vrot.lane.b32.xlu0 %v2699_v18, %s2397_s22  ;;  %1259 = vrot.lane.b32.xlu1 %v2706_v63, %s2396_s21  ;;  %v346_v10 = vsel %vm2504_vm7, %v338_v42, %v345_v49  ;;  %v930_v21 = vrot.slane %v928_v9, 1  ;;  %v476_v29 = vshrl.u32 %v197_v15, 16  ;;  %v673_v31 = vld [vmem:[#allocation2 + $0x9c] sm:$0xf]  ;;  %v470_v32 = vrot.slane %v468_v26, 7 }
  0x51   : > { %620 = vst.msk [vmem:[#allocation2 + $0x40] sm:$0xf] %vm204_vm0, %v346_v10  ;;  %v479_v33 = vshll.u32 %v197_v15, 16  ;;  %v182_v34 = vld [vmem:[%s2496_s17 + $0x28] sm:$0xf]  ;;  %v1017_v36 = vshrl.u32 %v2728_v11, 16 }
  0x52   : > { %v2752_v35 = vsel %vm883_vm2, %v926_v19, %v930_v21  ;;  %v478_v38 = vrot.slane %v476_v29, 7  ;;  %v183_v39 = vld [vmem:[%s2496_s17 + $0x2c] sm:$0xf]  ;;  %v1021_v40 = vrot.slane %v1019_v24, 1  ;;  %v1024_v43 = vshll.u32 %v2743_v22, 16 }
  0x53   : > { %v473_v46 = vor.u32 %v471_v28, %v470_v32  ;;  %v474_v47 = vrot.slane %v470_v32, 4  ;;  %v677_v52 = vld [vmem:[#allocation2 + $0xa4] sm:$0x1]  ;;  %v349_v58 = vshrl.u32 %v182_v34, 16  ;;  %v352_v60 = vshll.u32 %v182_v34, 16 }
  0x54   : > { %1313 = vrot.lane.b32.xlu0 %v2595_v53, %s2398_s23  ;;  %1292 = vrot.lane.b32.xlu1 %v2627_v37, %s2397_s22  ;;  %v347_v53 = vrot.slane %v342_v1, 4  ;;  %v481_v51 = vor.u32 %v479_v33, %v478_v38  ;;  %v483_v57 = vrot.slane %v478_v38, 4  ;;  %v357_v61 = vshrl.u32 %v183_v39, 16  ;;  %v198_v20 = vld [vmem:[%s2496_s17 + $0x68] sm:$0xf] }
  0x55   : > { %v674_v56 = vsel %vm2513_vm8, %v473_v46, %v673_v31  ;;  %v1022_v45 = vor.u32 %v1021_v40, %v1017_v36  ;;  %v1026_v6 = vrot.slane %v1024_v43, 1  ;;  %v351_v62 = vrot.slane %v349_v58, 7  ;;  %v624_v42 = vld [vmem:[#allocation2 + $0x48] sm:$0xf]  ;;  %v199_v2 = vld [vmem:[%s2496_s17 + $0x6c] sm:$0xf] }
  0x56   : > { %v622_v25 = vsel %vm2547_vm9, %v347_v53, %v621_v30  ;;  %675 = vst [vmem:[#allocation2 + $0x9c] sm:$0xf] %v674_v56  ;;  %v678_v48 = vsel %vm2547_vm9, %v483_v57, %v677_v52  ;;  %v359_v1 = vrot.slane %v357_v61, 7  ;;  %v360_v44 = vshll.u32 %v183_v39, 16  ;;  %v628_v49 = vld [vmem:[#allocation2 + $0x50] sm:$0x1] }
  0x57   : > { %623 = vst [vmem:[#allocation2 + $0x44] sm:$0x1] %v622_v25  ;;  %679 = vst [vmem:[#allocation2 + $0xa4] sm:$0x1] %v678_v48  ;;  %v1118_v3 = vrot.slane %v2690_v59, 1  ;;  %v354_v4 = vor.u32 %v352_v60, %v351_v62  ;;  %v355_v5 = vrot.slane %v351_v62, 4  ;;  %v2778_v30 = vsel %vm883_vm2, %v1022_v45, %v1026_v6 }
  0x58   : > { %1315 = vrot.lane.b32.xlu0 %v2690_v59, %s2398_s23  ;;  %1294 = vrot.lane.b32.xlu1 %v2732_v13, %s2397_s22  ;;  %v362_v7 = vor.u32 %v360_v44, %v359_v1  ;;  %v364_v8 = vrot.slane %v359_v1, 4  ;;  %v485_v9 = vshrl.u32 %v198_v20, 16  ;;  %v488_v10 = vshll.u32 %v198_v20, 16  ;;  %v184_v17 = vld [vmem:[%s2496_s17 + $0x30] sm:$0xf] }
  0x59   : > { %v1119_v53 = vrot.slane %v2708_v0, 1  ;;  %v625_v14 = vsel %vm2513_vm8, %v354_v4, %v624_v42  ;;  %v493_v15 = vshrl.u32 %v199_v2, 16  ;;  %v185_v19 = vld [vmem:[%s2496_s17 + $0x34] sm:$0xf]  ;;  %v496_v26 = vshll.u32 %v199_v2, 16 }
  0x5a   : > { %v363_v21 = vsel %vm2504_vm7, %v355_v5, %v362_v7  ;;  %626 = vst [vmem:[#allocation2 + $0x48] sm:$0xf] %v625_v14  ;;  %v629_v24 = vsel %vm2547_vm9, %v364_v8, %v628_v49  ;;  %v487_v25 = vrot.slane %v485_v9, 7  ;;  %v680_v28 = vld [vmem:[#allocation2 + $0xa8] sm:$0xf]  ;;  %v366_v33 = vshrl.u32 %v184_v17, 16 }
  0x5b   : > { %627 = vst.msk [vmem:[#allocation2 + $0x4c] sm:$0xf] %vm204_vm0, %v363_v21  ;;  %630 = vst [vmem:[#allocation2 + $0x50] sm:$0x1] %v629_v24  ;;  %v495_v0 = vrot.slane %v493_v15, 7  ;;  %v374_v34 = vshrl.u32 %v185_v19, 16  ;;  %v2795_v36 = vsel %vm1108_vm6, %v1118_v3, %v1119_v53 }
  0x5c   : > { %1360 = vrot.lane.b32.xlu0 %v2650_v54, %s2399_s26  ;;  %1329 = vrot.lane.b32.xlu1 %v2591_v50, %s2398_s23  ;;  %v482_v50 = vsel %vm2504_vm7, %v474_v47, %v481_v51  ;;  %v684_v29 = vld [vmem:[#allocation2 + $0xb0] sm:$0x1]  ;;  %v490_v31 = vor.u32 %v488_v10, %v487_v25  ;;  %v491_v32 = vrot.slane %v487_v25, 4  ;;  %v369_v43 = vshll.u32 %v184_v17, 16  ;;  %v631_v57 = vld [vmem:[#allocation2 + $0x54] sm:$0xf] }
  0x5d   : > { %676 = vst.msk [vmem:[#allocation2 + $0xa0] sm:$0xf] %vm204_vm0, %v482_v50  ;;  %v498_v38 = vor.u32 %v496_v26, %v495_v0  ;;  %v500_v39 = vrot.slane %v495_v0, 4  ;;  %v368_v47 = vrot.slane %v366_v33, 7  ;;  %v376_v51 = vrot.slane %v374_v34, 7  ;;  %v2828_v2 = vld [vmem:[#allocation2 + $0x30] sm:$0xff]  }
  0x5e   : > { %v681_v40 = vsel %vm2513_vm8, %v490_v31, %v680_v28  ;;  %v377_v52 = vshll.u32 %v185_v19, 16  ;;  %v1142_v56 = vrot.slane %v2728_v11, 1  ;;  %v1143_v58 = vrot.slane %v2743_v22, 1  ;;  %v200_v45 = vld [vmem:[%s2496_s17 + $0x70] sm:$0xf] }
  0x5f   : > { %v499_v46 = vsel %vm2504_vm7, %v491_v32, %v498_v38  ;;  %682 = vst [vmem:[#allocation2 + $0xa8] sm:$0xf] %v681_v40  ;;  %v371_v50 = vor.u32 %v369_v43, %v368_v47  ;;  %v372_v60 = vrot.slane %v368_v47, 4  ;;  %vm1746_vm10 = vcmask 1044480   ;;  %v2368_v22 = vld [vmem:[%s3482_s1 + $0x8] sm:$0x3f]  }
  0x60   : > { %1362 = vrot.lane.b32.xlu0 %v2752_v35, %s2399_s26  ;;  %1331 = vrot.lane.b32.xlu1 %v2728_v11, %s2398_s23  ;;  %683 = vst.msk [vmem:[#allocation2 + $0xac] sm:$0xf] %vm204_vm0, %v499_v46  ;;  %v379_v61 = vor.u32 %v377_v52, %v376_v51  ;;  %vm1747_vm11 = vcmask 1045504   ;;  %v635_v62 = vld [vmem:[#allocation2 + $0x5c] sm:$0x1]  ;;  %v2823_v20 = vsel %vm1108_vm6, %v1142_v56, %v1143_v58  ;;  %v381_v44 = vrot.slane %v376_v51, 4 }
  0x61   : > { %v632_v48 = vsel %vm2513_vm8, %v371_v50, %v631_v57  ;;  %v502_v42 = vshrl.u32 %v200_v45, 16  ;;  %v201_v5 = vld [vmem:[%s2496_s17 + $0x74] sm:$0xf]  ;;  %v505_v8 = vshll.u32 %v200_v45, 16  ;;  %v935_v14 = vshll.u32 %v2828_v2, 16 }
  0x62   : > { %v380_v6 = vsel %vm2504_vm7, %v372_v60, %v379_v61  ;;  %633 = vst [vmem:[#allocation2 + $0x54] sm:$0xf] %v632_v48  ;;  %v636_v4 = vsel %vm2547_vm9, %v381_v44, %v635_v62  ;;  %v2835_v9 = vld [vmem:[#allocation2 + $0x38] ss:$0 sps:$4 sm:$0x11]   ;;  %v513_v10 = vshll.u32 %v201_v5, 16 }
  0x63   : > { %634 = vst.msk [vmem:[#allocation2 + $0x58] sm:$0xf] %vm204_vm0, %v380_v6  ;;  %v504_v49 = vrot.slane %v502_v42, 7  ;;  %637 = vst [vmem:[#allocation2 + $0x5c] sm:$0x1] %v636_v4  ;;  %v933_v31 = vshrl.u32 %v2828_v2, 16 }
  0x64   : > { %1395 = vrot.lane.b32.xlu0 %v2699_v18, %s2400_s27  ;;  %1376 = vrot.lane.b32.xlu1 %v2706_v63, %s2399_s26  ;;  %v687_v53 = vld [vmem:[#allocation2 + $0xb4] sm:$0xf]  ;;  %v202_v17 = vld [vmem:[%s2496_s17 + $0x78] sm:$0xf]  ;;  %v203_v19 = vld [vmem:[%s2496_s17 + $0x7c] sm:$0xf] }
  0x65   : > { %v507_v15 = vor.u32 %v505_v8, %v504_v49  ;;  %v508_v21 = vrot.slane %v504_v49, 4  ;;  %v519_v26 = vshrl.u32 %v202_v17, 16  ;;  %v691_v0 = vld [vmem:[#allocation2 + $0xbc] sm:$0x1]  ;;  %v937_v33 = vrot.slane %v935_v14, 1  ;;  %v2854_v40 = vld [vmem:[#allocation2 + $0x90] sm:$0xff]  }
  0x66   : > { %v940_v34 = vshll.u32 %v2835_v9, 16  ;;  %v522_v43 = vshll.u32 %v202_v17, 16  ;;  %v530_v47 = vshll.u32 %v203_v19, 16  ;;  %v698_v50 = vld [vmem:[#allocation2 + $0xc8] sm:$0x1]  ;;  %v1031_v61 = vshll.u32 %v2854_v40, 16 }
  0x67   : > { %v688_v25 = vsel %vm2513_vm8, %v507_v15, %v687_v53  ;;  %v938_v52 = vor.u32 %v937_v33, %v933_v31  ;;  %v2357_v60 = vld [vmem:[#allocation2 + $0x98] ss:$0 sps:$4 sm:$0x11]   ;;  %v1029_v23 = vshrl.u32 %v2854_v40, 16  ;;  %v1121_v12 = vrot.slane %v2828_v2, 1  ;;  %v2887_v44 = vld [vmem:[#allocation2 + $0x3c] sm:$0xff]  }
  0x68   : > { %1080 = vrot.lane.b32.xlu0 %v2650_v54, %s2394_s19  ;;  %1378 = vrot.lane.b32.xlu1 %v2778_v30, %s2399_s26  ;;  %v685_v54 = vsel %vm2547_vm9, %v500_v39, %v684_v29  ;;  %689 = vst [vmem:[#allocation2 + $0xb4] sm:$0xf] %v688_v25  ;;  %v527_v29 = vshrl.u32 %v203_v19, 16  ;;  %v521_v39 = vrot.slane %v519_v26, 7  ;;  %v942_v56 = vrot.slane %v940_v34, 1 }
  0x69   : > { %686 = vst [vmem:[#allocation2 + $0xb0] sm:$0x1] %v685_v54  ;;  %v1033_v62 = vrot.slane %v1031_v61, 1  ;;  %v1036_v16 = vshll.u32 %v2357_v60, 16  ;;  %v947_v4 = vshll.u32 %v2887_v44, 16  ;;  %v1146_v49 = vrot.slane %v2357_v60, 1 }
  0x6a   : > { %v525_v46 = vrot.slane %v521_v39, 4  ;;  %v529_v54 = vrot.slane %v527_v29, 7  ;;  %v524_v51 = vor.u32 %v522_v43, %v521_v39  ;;  %v2361_v14 = vld [vmem:[#allocation2 + $0xa4] ss:$0 sps:$4 sm:$0x11]   ;;  %v1124_v29 = vrot.slane %v2887_v44, 1 }
  0x6b   : > { %v1149_v43 = vrot.slane %v2361_v14, 1  ;;  %vm1427_vm12 = vcmask 23552   ;;  %vm1460_vm13 = vcmask 48128   ;;  %vm1493_vm14 = vcmask 72704  }
  0x6c   : > { %1397 = vrot.lane.b32.xlu0 %v2795_v36, %s2400_s27  ;;  %1411 = vrot.lane.b32.xlu1 %v2732_v13, %s2400_s27  ;;  %v532_v57 = vor.u32 %v530_v47, %v529_v54  ;;  %v534_v58 = vrot.slane %v529_v54, 4  ;;  %vm1526_vm15 = vcmask 97280   ;;  %vm1592_vm1 = vcmask 146432  }
  0x6d   : > { %vm1625_vm3 = vcmask 171008   ;;  %vm1658_vm4 = vcmask 195584   ;;  %vm1713_vm5 = vcmask 220160  }
  0x6e   : > { %v533_v6 = vsel %vm2504_vm7, %v525_v46, %v532_v57  ;;  %v699_v48 = vsel %vm2547_vm9, %v534_v58, %v698_v50  ;;  %v2363_v57 = vld [vmem:[#allocation2 + $0x50] ss:$0 sps:$4 sm:$0x11]  }
  0x6f   : > { %697 = vst.msk [vmem:[#allocation2 + $0xc4] sm:$0xf] %vm204_vm0, %v533_v6  ;;  %700 = vst [vmem:[#allocation2 + $0xc8] sm:$0x1] %v699_v48  ;;  %v964_v6 = vshll.u32 %v2363_v57, 16 }
  0x70   : > { %1082 = vrot.lane.b32.xlu0 %v2752_v35, %s2394_s19  ;;  %1096 = vrot.lane.b32.xlu1 %v2706_v63, %s2394_s19  ;;  %v2401_v63 = vmov 65535  }
  0x71   : > { %v1748_v1 = vsel %vm1746_vm10, 4294967295, %v2401_v63  ;;  %v1034_v63 = vor.u32 %v1033_v62, %v1029_v23 }
  0x72   : > { %v1749_v3 = vsel %vm1747_vm11, %v1748_v1, 0  ;;  %v1038_v1 = vrot.slane %v1036_v16, 1  ;;  %v966_v16 = vrot.slane %v964_v6, 1  ;;  %v3041_v6 = vld [vmem:[#allocation2 + $0x60] sm:$0xff]  }
  0x73   : > { %v1751_v7 = vand.u32 %v2368_v22, %v1749_v3  ;;  %v943_v22 = vsel %vm883_vm2, %v938_v52, %v942_v56  ;;  %v2359_v3 = vld [vmem:[#allocation2 + $0x44] ss:$0 sps:$4 sm:$0x11]  }
  0x74   : > { %1161 = vrot.lane.b32.xlu0 %v2699_v18, %s2393_s18  ;;  %1413 = vrot.lane.b32.xlu1 %v2823_v20, %s2400_s27  ;;  %v510_v18 = vshrl.u32 %v201_v5, 16  ;;  %v1039_v42 = vsel %vm883_vm2, %v1034_v63, %v1038_v1  ;;  %v1145_v5 = vrot.slane %v2854_v40, 1  ;;  %v952_v8 = vshll.u32 %v2359_v3, 16 }
  0x75   : > { %2282 = vmatprep.subr.bf16.mxu0 %v1751_v7  ;;  %2317 = vmatprep.subr.bf16.mxu1 %v1751_v7  ;;  %v1125_v31 = vrot.slane %v2359_v3, 1 }
  0x76   : > { %2283 = vmatpush3.bf16.msra.mxu0 %v1751_v7  ;;  %v512_v24 = vrot.slane %v510_v18, 7  ;;  %2319 = vmatpush3.bf16.msra.mxu1 %v1751_v7  ;;  %v949_v7 = vrot.slane %v947_v4, 1  ;;  %v2902_v18 = vld [vmem:[#allocation2 + $0x9c] sm:$0xff]   ;;  %v954_v53 = vrot.slane %v952_v8, 1 }
  0x77   : > { %v1041_v19 = vshrl.u32 %v2902_v18, 16 }
  0x78   : > { %1163 = vrot.lane.b32.xlu0 %v2795_v36, %s2393_s18  ;;  %1098 = vrot.lane.b32.xlu1 %v2778_v30, %s2394_s19  ;;  %v515_v28 = vor.u32 %v513_v10, %v512_v24  ;;  %v517_v32 = vrot.slane %v512_v24, 4  ;;  %v1048_v24 = vshll.u32 %v2361_v14, 16  ;;  %v2376_v14 = vld [vmem:[#allocation2] sm:$0xff]  }
  0x7a   : > { %v516_v38 = vsel %vm2504_vm7, %v508_v21, %v515_v28  ;;  %v1050_v28 = vrot.slane %v1048_v24, 1 }
  0x7b   : > { %690 = vst.msk [vmem:[#allocation2 + $0xb8] sm:$0xf] %vm204_vm0, %v516_v38  ;;  %v1126_v38 = vsel %vm1108_vm6, %v1124_v29, %v1125_v31  ;;  %vm1559_vm0 = vcmask 121856  }
  0x7c   : > { %1198 = vrot.lane.b32.xlu0 %v2690_v59, %s2395_s20  ;;  %1177 = vrot.lane.b32.xlu1 %v2732_v13, %s2393_s18  ;;  %v692_v59 = vsel %vm2547_vm9, %v517_v32, %v691_v0  ;;  %v694_v13 = vld [vmem:[#allocation2 + $0xc0] sm:$0xf] }
  0x7d   : > { %693 = vst [vmem:[#allocation2 + $0xbc] sm:$0x1] %v692_v59  ;;  %v695_v45 = vsel %vm2513_vm8, %v524_v51, %v694_v13  ;;  %v1148_v59 = vrot.slane %v2902_v18, 1  ;;  %v2955_v51 = vld [vmem:[#allocation2 + $0x48] sm:$0xff]  }
  0x7e   : > { %696 = vst [vmem:[#allocation2 + $0xc0] sm:$0xf] %v695_v45  ;;  %v959_v58 = vshll.u32 %v2955_v51, 16  ;;  %v957_v61 = vshrl.u32 %v2955_v51, 16 }
  0x7f   : > { %v2948_v47 = vsel %vm1108_vm6, %v1148_v59, %v1149_v43 }
  0x80   : > { %1200 = vrot.lane.b32.xlu0 %v2828_v2, %s2395_s20  ;;  %1179 = vrot.lane.b32.xlu1 %v2823_v20, %s2393_s18  ;;  %v961_v45 = vrot.slane %v959_v58, 1 }
  0x82   : > { %v962_v62 = vor.u32 %v961_v45, %v957_v61 }
  0x84   : > { %1245 = vrot.lane.b32.xlu0 %v2752_v35, %s2396_s21  ;;  %1214 = vrot.lane.b32.xlu1 %v2728_v11, %s2395_s20  ;;  %v1122_v35 = vrot.slane %v2835_v9, 1  ;;  %v1147_v9 = vsel %vm1108_vm6, %v1145_v5, %v1146_v49 }
  0x86   : > { %v1123_v11 = vsel %vm1108_vm6, %v1121_v12, %v1122_v35  ;;  %v2981_v35 = vld [vmem:[#allocation2 + $0xb0] ss:$0 sps:$4 sm:$0x11]  }
  0x87   : > { %v1060_v5 = vshll.u32 %v2981_v35, 16  ;;  %v1152_v43 = vrot.slane %v2981_v35, 1 }
  0x88   : > { %1247 = vrot.lane.b32.xlu0 %v943_v22, %s2396_s21  ;;  %1216 = vrot.lane.b32.xlu1 %v2854_v40, %s2395_s20 }
  0x8c   : > { %1280 = vrot.lane.b32.xlu0 %v2795_v36, %s2397_s22  ;;  %1261 = vrot.lane.b32.xlu1 %v2778_v30, %s2396_s21  ;;  %v945_v36 = vshrl.u32 %v2887_v44, 16 }
  0x8e   : > { %v950_v10 = vor.u32 %v949_v7, %v945_v36  ;;  %v1127_v36 = vrot.slane %v2955_v51, 1  ;;  %v1128_v7 = vrot.slane %v2363_v57, 1 }
  0x90   : > { %1282 = vrot.lane.b32.xlu0 %v1123_v11, %s2397_s22  ;;  %1263 = vrot.lane.b32.xlu1 %v1039_v42, %s2396_s21  ;;  %v955_v17 = vsel %vm883_vm2, %v950_v10, %v954_v53  ;;  %v1062_v10 = vrot.slane %v1060_v5, 1 }
  0x94   : > { %1317 = vrot.lane.b32.xlu0 %v2828_v2, %s2398_s23  ;;  %1296 = vrot.lane.b32.xlu1 %v2823_v20, %s2397_s22  ;;  %v1043_v20 = vshll.u32 %v2902_v18, 16 }
  0x96   : > { %v1045_v21 = vrot.slane %v1043_v20, 1 }
  0x97   : > { %v2898_v30 = vpop.permute.xlu0 %1157 }
  0x98   : > { %1319 = vrot.lane.b32.xlu0 %v2887_v44, %s2398_s23  ;;  %1298 = vrot.lane.b32.xlu1 %v1147_v9, %s2397_s22  ;;  %v1046_v26 = vor.u32 %v1045_v21, %v1041_v19  ;;  %v3013_v19 = vsel %vm1108_vm6, %v1127_v36, %v1128_v7  ;;  %v3069_v7 = vld [vmem:[#allocation2 + $0xbc] ss:$0 sps:$4 sm:$0x11]  }
  0x9a   : > { %v2926_v32 = vsel %vm883_vm2, %v1046_v26, %v1050_v28  ;;  %v3022_v28 = vld [vmem:[#allocation2 + $0x5c] ss:$0 sps:$4 sm:$0x11]  }
  0x9b   : > { %v2908_v15 = vpop.permute.xlu0 %1076  ;;  %v976_v45 = vshll.u32 %v3022_v28, 16 }
  0x9c   : > { %1364 = vrot.lane.b32.xlu0 %v943_v22, %s2399_s26  ;;  %1333 = vrot.lane.b32.xlu1 %v2854_v40, %s2398_s23  ;;  %v1429_v20 = vsel %vm1427_vm12, %v2376_v14, %v2908_v15 }
  0x9d   : > { %v1462_v26 = vsel %vm1460_vm13, %v1429_v20, %v2898_v30  ;;  %v978_v5 = vrot.slane %v976_v45, 1 }
  0x9e   : > { %v2920_v0 = vpop.permute.xlu1 %1210 }
  0xa0   : > { %1366 = vrot.lane.b32.xlu0 %v955_v17, %s2399_s26  ;;  %1335 = vrot.lane.b32.xlu1 %v2902_v18, %s2398_s23 }
  0xa1   : > { %v2918_v25 = vpop.permute.xlu0 %1194 }
  0xa2   : > { %v1495_v31 = vsel %vm1493_vm14, %v1462_v26, %v2918_v25  ;;  %v3085_v26 = vld [vmem:[#allocation2 + $0x6c] sm:$0xff]  }
  0xa4   : > { %1399 = vrot.lane.b32.xlu0 %v1123_v11, %s2400_s27  ;;  %1380 = vrot.lane.b32.xlu1 %v1039_v42, %s2399_s26 }
  0xa5   : > { %v2933_v34 = vpop.permute.xlu1 %1212 }
  0xa6   : > { %v2928_v33 = vpop.permute.xlu0 %1196 }
  0xa8   : > { %1084 = vrot.lane.b32.xlu0 %v943_v22, %s2394_s19  ;;  %1382 = vrot.lane.b32.xlu1 %v2926_v32, %s2399_s26  ;;  %v2971_v22 = vld [vmem:[#allocation2 + $0xa8] sm:$0xff]  }
  0xa9   : > { %v1055_v63 = vshll.u32 %v2971_v22, 16  ;;  %v1053_v3 = vshrl.u32 %v2971_v22, 16  ;;  %v1151_v59 = vrot.slane %v2971_v22, 1 }
  0xaa   : > { %v2937_v39 = vpop.permute.xlu0 %1159 }
  0xab   : > { %v1057_v4 = vrot.slane %v1055_v63, 1  ;;  %v3053_v63 = vsel %vm1108_vm6, %v1151_v59, %v1152_v43  ;;  %v1072_v59 = vshll.u32 %v3069_v7, 16 }
  0xac   : > { %1401 = vrot.lane.b32.xlu0 %v1126_v38, %s2400_s27  ;;  %1415 = vrot.lane.b32.xlu1 %v1147_v9, %s2400_s27 }
  0xae   : > { %v2941_v46 = vpop.permute.xlu1 %1173 }
  0xb0   : > { %1086 = vrot.lane.b32.xlu0 %v955_v17, %s2394_s19  ;;  %1100 = vrot.lane.b32.xlu1 %v1039_v42, %s2394_s19 }
  0xb2   : > { %v2945_v54 = vpop.permute.xlu0 %1092  ;;  %v2950_v13 = vpop.permute.xlu1 %1175 }
  0xb4   : > { %1165 = vrot.lane.b32.xlu0 %v1123_v11, %s2393_s18  ;;  %1417 = vrot.lane.b32.xlu1 %v2948_v47, %s2400_s27  ;;  %v2990_v11 = vsel %vm883_vm2, %v962_v62, %v966_v16 }
  0xb6   : > { %v2957_v52 = vpop.permute.xlu0 %1241  ;;  %v1079_v56 = vpop.permute.xlu1 %1078 }
  0xb7   : > { %v1528_v57 = vsel %vm1526_vm15, %v1495_v31, %v2957_v52  ;;  %v1445_v52 = vsel %vm1427_vm12, %v3041_v6, %v2945_v54 }
  0xb8   : > { %1167 = vrot.lane.b32.xlu0 %v1126_v38, %s2393_s18  ;;  %1102 = vrot.lane.b32.xlu1 %v2926_v32, %s2394_s19 }
  0xba   : > { %v2963_v50 = vpop.permute.xlu0 %1243  ;;  %v2965_v60 = vpop.permute.xlu1 %1094 }
  0xbc   : > { %1202 = vrot.lane.b32.xlu0 %v2887_v44, %s2395_s20  ;;  %1181 = vrot.lane.b32.xlu1 %v1147_v9, %s2393_s18  ;;  %v1058_v9 = vor.u32 %v1057_v4, %v1053_v3  ;;  %v3055_v3 = vld [vmem:[#allocation2 + $0xb4] sm:$0xff]  }
  0xbe   : > { %v1277_v48 = vpop.permute.xlu0 %1276  ;;  %v2973_v23 = vpop.permute.xlu1 %1257  ;;  %v3016_v24 = vsel %vm883_vm2, %v1058_v9, %v1062_v10  ;;  %v1067_v9 = vshll.u32 %v3055_v3, 16 }
  0xbf   : > { %v1561_v61 = vsel %vm1559_vm0, %v1528_v57, %v1277_v48 }
  0xc0   : > { %1204 = vrot.lane.b32.xlu0 %v2955_v51, %s2395_s20  ;;  %1183 = vrot.lane.b32.xlu1 %v2948_v47, %s2393_s18 }
  0xc2   : > { %v2979_v12 = vpop.permute.xlu0 %1278  ;;  %v2984_v1 = vpop.permute.xlu1 %1259 }
  0xc4   : > { %1249 = vrot.lane.b32.xlu0 %v955_v17, %s2396_s21  ;;  %1218 = vrot.lane.b32.xlu1 %v2902_v18, %s2395_s20  ;;  %v3008_v17 = vld [vmem:[#allocation2 + $0x54] sm:$0xff]  }
  0xc5   : > { %v971_v29 = vshll.u32 %v3008_v17, 16  ;;  %v969_v25 = vshrl.u32 %v3008_v17, 16 }
  0xc6   : > { %v1314_v42 = vpop.permute.xlu0 %1313  ;;  %v2994_v49 = vpop.permute.xlu1 %1292 }
  0xc7   : > { %v1594_v16 = vsel %vm1592_vm1, %v1561_v61, %v1314_v42  ;;  %v1074_v61 = vrot.slane %v1072_v59, 1 }
  0xc8   : > { %1251 = vrot.lane.b32.xlu0 %v2990_v11, %s2396_s21  ;;  %1220 = vrot.lane.b32.xlu1 %v2971_v22, %s2395_s20 }
  0xca   : > { %v3001_v8 = vpop.permute.xlu0 %1315  ;;  %v3003_v53 = vpop.permute.xlu1 %1294 }
  0xcc   : > { %1284 = vrot.lane.b32.xlu0 %v1126_v38, %s2397_s22  ;;  %1265 = vrot.lane.b32.xlu1 %v2926_v32, %s2396_s21  ;;  %v2377_v32 = vld [vmem:[#allocation2 + $0xc] sm:$0xff]  }
  0xcd   : > { %v1431_v30 = vsel %vm1427_vm12, %v2377_v32, %v1079_v56  ;;  %v973_v56 = vrot.slane %v971_v29, 1 }
  0xce   : > { %v1361_v21 = vpop.permute.xlu0 %1360  ;;  %v1330_v15 = vpop.permute.xlu1 %1329  ;;  %v1464_v62 = vsel %vm1460_vm13, %v1431_v30, %v2937_v39  ;;  %v1478_v39 = vsel %vm1460_vm13, %v1445_v52, %v2941_v46  ;;  %v1069_v30 = vrot.slane %v1067_v9, 1  ;;  %v1130_v52 = vrot.slane %v3008_v17, 1 }
  0xcf   : > { %v1627_v48 = vsel %vm1625_vm3, %v1594_v16, %v1361_v21  ;;  %v1497_v42 = vsel %vm1493_vm14, %v1464_v62, %v2928_v33  ;;  %v1511_v33 = vsel %vm1493_vm14, %v1478_v39, %v2920_v0  ;;  %v1131_v62 = vrot.slane %v3022_v28, 1 }
  0xd0   : > { %1286 = vrot.lane.b32.xlu0 %v3013_v19, %s2397_s22  ;;  %1267 = vrot.lane.b32.xlu1 %v3016_v24, %s2396_s21  ;;  %v1530_v46 = vsel %vm1526_vm15, %v1497_v42, %v2963_v50  ;;  %v1544_v14 = vsel %vm1526_vm15, %v1511_v33, %v2973_v23  ;;  %v1447_v50 = vsel %vm1427_vm12, %v3085_v26, %v2965_v60  ;;  %v1154_v39 = vrot.slane %v3055_v3, 1 }
  0xd1   : > { %v1563_v20 = vsel %vm1559_vm0, %v1530_v46, %v2979_v12  ;;  %v1577_v0 = vsel %vm1559_vm0, %v1544_v14, %v2994_v49  ;;  %v1065_v12 = vshrl.u32 %v3055_v3, 16 }
  0xd2   : > { %v1363_v38 = vpop.permute.xlu0 %1362  ;;  %v3034_v58 = vpop.permute.xlu1 %1331  ;;  %v1596_v23 = vsel %vm1592_vm1, %v1563_v20, %v3001_v8  ;;  %v1610_v29 = vsel %vm1592_vm1, %v1577_v0, %v1330_v15  ;;  %v1480_v8 = vsel %vm1460_vm13, %v1447_v50, %v2950_v13  ;;  %v2373_v50 = vld [vmem:[#allocation2 + $0xc8] ss:$0 sps:$4 sm:$0x11]  }
  0xd3   : > { %v1629_v31 = vsel %vm1625_vm3, %v1596_v23, %v1363_v38  ;;  %v1070_v57 = vor.u32 %v1069_v30, %v1065_v12 }
  0xd4   : > { %1321 = vrot.lane.b32.xlu0 %v2955_v51, %s2398_s23  ;;  %1300 = vrot.lane.b32.xlu1 %v2948_v47, %s2397_s22  ;;  %v974_v47 = vor.u32 %v973_v56, %v969_v25  ;;  %v1513_v25 = vsel %vm1493_vm14, %v1480_v8, %v2933_v34 }
  0xd5   : > { %v1546_v56 = vsel %vm1526_vm15, %v1513_v25, %v2984_v1  ;;  %v1075_v1 = vsel %vm883_vm2, %v1070_v57, %v1074_v61 }
  0xd6   : > { %v1396_v35 = vpop.permute.xlu0 %1395  ;;  %v1377_v4 = vpop.permute.xlu1 %1376  ;;  %v3083_v21 = vsel %vm883_vm2, %v974_v47, %v978_v5  ;;  %v1579_v45 = vsel %vm1559_vm0, %v1546_v56, %v3003_v53  ;;  %v1132_v53 = vsel %vm1108_vm6, %v1130_v52, %v1131_v62  ;;  %v1274_v52 = vrot.slane %v2373_v50, 1 }
  0xd7   : > { %v1660_v54 = vsel %vm1658_vm4, %v1627_v48, %v1396_v35  ;;  %v1643_v60 = vsel %vm1625_vm3, %v1610_v29, %v1377_v4  ;;  %v1612_v34 = vsel %vm1592_vm1, %v1579_v45, %v3034_v58 }
  0xd8   : > { %1323 = vrot.lane.b32.xlu0 %v3008_v17, %s2398_s23  ;;  %2284 = vmatprep.mubr.msk.bf16.mxu0 %vm1713_vm5, %v1660_v54 }
  0xd9   : > { %1302 = vrot.lane.b32.xlu1 %v3053_v63, %s2397_s22 }
  0xda   : > { %v3067_v36 = vpop.permute.xlu0 %1080  ;;  %v1379_v10 = vpop.permute.xlu1 %1378 }
  0xdb   : > { %v1645_v48 = vsel %vm1625_vm3, %v1612_v34, %v1379_v10  ;;  %v3174_v10 = vld [vmem:[#allocation2 + $0xc0] sm:$0xff]  }
  0xdc   : > { %1368 = vrot.lane.b32.xlu0 %v2990_v11, %s2399_s26  ;;  %v1232_v0 = vshll.u32 %v3174_v10, 16  ;;  %v1230_v12 = vshrl.u32 %v3174_v10, 16  ;;  %v1273_v45 = vrot.slane %v3174_v10, 1 }
  0xdd   : > { %1337 = vrot.lane.b32.xlu1 %v2971_v22, %s2398_s23 }
  0xde   : > { %v1398_v32 = vpop.permute.xlu0 %1397  ;;  %v1412_v43 = vpop.permute.xlu1 %1411  ;;  %v1234_v29 = vrot.slane %v1232_v0, 1 }
  0xdf   : > { %v1662_v49 = vsel %vm1658_vm4, %v1629_v31, %v1398_v32  ;;  %v1676_v15 = vsel %vm1658_vm4, %v1643_v60, %v1412_v43  ;;  %v1237_v31 = vshll.u32 %v2373_v50, 16 }
  0xe0   : > { %1370 = vrot.lane.b32.xlu0 %v3083_v21, %s2399_s26  ;;  %2285 = vmatmul.mubr.msk.bf16.vlgmr.msra.gmra.mrb[0].mxu0 %vm1713_vm5, %v1662_v49  ;;  %v1235_v59 = vor.u32 %v1234_v29, %v1230_v12 }
  0xe1   : > { %1339 = vrot.lane.b32.xlu1 %v3055_v3, %s2398_s23  ;;  %2300 = vmatprep.mubr.msk.bf16.mxu1 %vm1713_vm5, %v1676_v15  ;;  %v1239_v60 = vrot.slane %v1237_v31, 1  ;;  %v2380_v15 = vld [vmem:[#allocation2 + $0x18] sm:$0xff]  }
  0xe2   : > { %v3111_v38 = vpop.permute.xlu0 %1082  ;;  %v3115_v13 = vpop.permute.xlu1 %1096  ;;  %v1433_v57 = vsel %vm1427_vm12, %v2380_v15, %v3067_v36 }
  0xe3   : > { %v3198_v43 = vsel %vm883_vm2, %v1235_v59, %v1239_v60 }
  0xe4   : > { %1403 = vrot.lane.b32.xlu0 %v3013_v19, %s2400_s27 }
  0xe5   : > { %1384 = vrot.lane.b32.xlu1 %v3016_v24, %s2399_s26 }
  0xe6   : > { %v3129_v16 = vpop.permute.xlu0 %1161  ;;  %v1414_v35 = vpop.permute.xlu1 %1413 }
  0xe7   : > { %v1678_v4 = vsel %vm1658_vm4, %v1645_v48, %v1414_v35  ;;  %v1466_v61 = vsel %vm1460_vm13, %v1433_v57, %v3129_v16  ;;  %v2381_v16 = vld [vmem:[#allocation2 + $0x24] sm:$0xff]  }
  0xe8   : > { %1088 = vrot.lane.b32.xlu0 %v2990_v11, %s2394_s19  ;;  %2301 = vmatmul.mubr.msk.bf16.vlgmr.msra.gmra.mrb[0].mxu1 %vm1713_vm5, %v1678_v4  ;;  %v1155_v11 = vrot.slane %v3069_v7, 1  ;;  %v1435_v48 = vsel %vm1427_vm12, %v2381_v16, %v3111_v38 }
  0xe9   : > { %1386 = vrot.lane.b32.xlu1 %v1075_v1, %s2399_s26 }
  0xea   : > { %v3139_v28 = vpop.permute.xlu0 %1163  ;;  %v3141_v58 = vpop.permute.xlu1 %1098  ;;  %v1156_v5 = vsel %vm1108_vm6, %v1154_v39, %v1155_v11 }
  0xeb   : > { %v1468_v38 = vsel %vm1460_vm13, %v1435_v48, %v3139_v28 }
  0xec   : > { %1405 = vrot.lane.b32.xlu0 %v1132_v53, %s2400_s27 }
  0xed   : > { %1419 = vrot.lane.b32.xlu1 %v3053_v63, %s2400_s27 }
  0xee   : > { %v1199_v54 = vpop.permute.xlu0 %1198  ;;  %v3148_v42 = vpop.permute.xlu1 %1177 }
  0xef   : > { %v1499_v25 = vsel %vm1493_vm14, %v1466_v61, %v1199_v54  ;;  %v3220_v54 = vld [vmem:[#allocation2 + $0xcc] sm:$0xff]  }
  0xf0   : > { %1090 = vrot.lane.b32.xlu0 %v3083_v21, %s2394_s19  ;;  %v1351_v0 = vshll.u32 %v3220_v54, 16 }
  0xf1   : > { %1104 = vrot.lane.b32.xlu1 %v3016_v24, %s2394_s19 }
  0xf2   : > { %v3154_v47 = vpop.permute.xlu0 %1200  ;;  %v3157_v9 = vpop.permute.xlu1 %1179 }
  0xf4   : > { %1169 = vrot.lane.b32.xlu0 %v3013_v19, %s2393_s18 }
  0xf5   : > { %1421 = vrot.lane.b32.xlu1 %v1156_v5, %s2400_s27 }
  0xf6   : > { %v1246_v7 = vpop.permute.xlu0 %1245  ;;  %v3162_v46 = vpop.permute.xlu1 %1214 }
  0xf7   : > { %v1532_v62 = vsel %vm1526_vm15, %v1499_v25, %v1246_v7 }
  0xf8   : > { %1171 = vrot.lane.b32.xlu0 %v1132_v53, %s2393_s18 }
  0xf9   : > { %1106 = vrot.lane.b32.xlu1 %v1075_v1, %s2394_s19 }
  0xfa   : > { %v3166_v33 = vpop.permute.xlu0 %1247  ;;  %v3168_v24 = vpop.permute.xlu1 %1216 }
  0xfc   : > { %1206 = vrot.lane.b32.xlu0 %v3008_v17, %s2395_s20 }
  0xfd   : > { %1185 = vrot.lane.b32.xlu1 %v3053_v63, %s2393_s18 }
  0xfe   : > { %v1281_v19 = vpop.permute.xlu0 %1280  ;;  %v3176_v14 = vpop.permute.xlu1 %1261 }
  0xff   : > { %v1565_v36 = vsel %vm1559_vm0, %v1532_v62, %v1281_v19  ;;  %v1501_v19 = vsel %vm1493_vm14, %v1468_v38, %v3154_v47 }
 0x100   : > { %1208 = vrot.lane.b32.xlu0 %v3041_v6, %s2395_s20 }
 0x101   : > { %1187 = vrot.lane.b32.xlu1 %v1156_v5, %s2393_s18 }
 0x102   : > { %v1283_v20 = vpop.permute.xlu0 %1282  ;;  %v3182_v23 = vpop.permute.xlu1 %1263 }
 0x104   : > { %1253 = vrot.lane.b32.xlu0 %v3083_v21, %s2396_s21 }
 0x105   : > { %1222 = vrot.lane.b32.xlu1 %v3055_v3, %s2395_s20 }
 0x106   : > { %v1318_v63 = vpop.permute.xlu0 %1317  ;;  %v1297_v32 = vpop.permute.xlu1 %1296 }
 0x108   : > { %1255 = vrot.lane.b32.xlu0 %v2632_v41, %s2396_s21 }
 0x109   : > { %1224 = vrot.lane.b32.xlu1 %v3174_v10, %s2395_s20 }
 0x10a   : > { %v1320_v30 = vpop.permute.xlu0 %1319  ;;  %v3193_v49 = vpop.permute.xlu1 %1298 }
 0x10c   : > { %1288 = vrot.lane.b32.xlu0 %v1132_v53, %s2397_s22  ;;  %v1275_v53 = vsel %vm1108_vm6, %v1273_v45, %v1274_v52 }
 0x10d   : > { %1269 = vrot.lane.b32.xlu1 %v1075_v1, %s2396_s21  ;;  %v1598_v1 = vsel %vm1592_vm1, %v1565_v36, %v1318_v63 }
 0x10e   : > { %v1365_v21 = vpop.permute.xlu0 %1364  ;;  %v1334_v8 = vpop.permute.xlu1 %1333 }
 0x10f   : > { %v1631_v35 = vsel %vm1625_vm3, %v1598_v1, %v1365_v21 }
 0x110   : > { %1290 = vrot.lane.b32.xlu0 %v2618_v27, %s2397_s22 }
 0x111   : > { %1271 = vrot.lane.b32.xlu1 %v3198_v43, %s2396_s21 }
 0x112   : > { %v1367_v56 = vpop.permute.xlu0 %1366  ;;  %v1336_v34 = vpop.permute.xlu1 %1335 }
 0x114   : > { %1325 = vrot.lane.b32.xlu0 %v3041_v6, %s2398_s23  ;;  %v2382_v6 = vld [vmem:[#allocation2 + $0x78] sm:$0xff]  }
 0x115   : > { %1304 = vrot.lane.b32.xlu1 %v1156_v5, %s2397_s22  ;;  %v1449_v5 = vsel %vm1427_vm12, %v2382_v6, %v3115_v13  ;;  %v1534_v13 = vsel %vm1526_vm15, %v1501_v19, %v3166_v33 }
 0x116   : > { %v1400_v4 = vpop.permute.xlu0 %1399  ;;  %v1381_v11 = vpop.permute.xlu1 %1380  ;;  %v1482_v7 = vsel %vm1460_vm13, %v1449_v5, %v3148_v42  ;;  %v1567_v42 = vsel %vm1559_vm0, %v1534_v13, %v1283_v20 }
 0x117   : > { %v1664_v39 = vsel %vm1658_vm4, %v1631_v35, %v1400_v4  ;;  %v1515_v63 = vsel %vm1493_vm14, %v1482_v7, %v3162_v46  ;;  %v1600_v29 = vsel %vm1592_vm1, %v1567_v42, %v1320_v30  ;;  %v1349_v46 = vshrl.u32 %v3220_v54, 16 }
 0x118   : > { %1327 = vrot.lane.b32.xlu0 %v3085_v26, %s2398_s23  ;;  %2288 = vmatprep.mubr.msk.bf16.mxu0 %vm1713_vm5, %v1664_v39  ;;  %v2375_v26 = vld [vmem:[#allocation2 + $0xd4] ss:$0 sps:$4 sm:$0x11]   ;;  %v1548_v12 = vsel %vm1526_vm15, %v1515_v63, %v3176_v14  ;;  %v1633_v31 = vsel %vm1625_vm3, %v1600_v29, %v1367_v56  ;;  %v1353_v14 = vrot.slane %v1351_v0, 1 }
 0x119   : > { %1306 = vrot.lane.b32.xlu1 %v1275_v53, %s2397_s22  ;;  %v1581_v47 = vsel %vm1559_vm0, %v1548_v12, %v1297_v32  ;;  %v1356_v60 = vshll.u32 %v2375_v26, 16 }
 0x11a   : > { %v3235_v50 = vpop.permute.xlu0 %1084  ;;  %v1383_v28 = vpop.permute.xlu1 %1382  ;;  %v1614_v33 = vsel %vm1592_vm1, %v1581_v47, %v1334_v8  ;;  %v1354_v57 = vor.u32 %v1353_v14, %v1349_v46 }
 0x11b   : > { %v1647_v20 = vsel %vm1625_vm3, %v1614_v33, %v1381_v11  ;;  %v1358_v61 = vrot.slane %v1356_v60, 1  ;;  %v1437_v13 = vsel %vm1427_vm12, %v2828_v2, %v3235_v50 }
 0x11c   : > { %1372 = vrot.lane.b32.xlu0 %v2632_v41, %s2399_s26 }
 0x11d   : > { %1341 = vrot.lane.b32.xlu1 %v3174_v10, %s2398_s23  ;;  %v2383_v10 = vld [vmem:[#allocation2 + $0x84] sm:$0xff]   ;;  %v1359_v52 = vsel %vm883_vm2, %v1354_v57, %v1358_v61  ;;  %vm2042_vm2 = vcmask 60416  }
 0x11e   : > { %v1402_v59 = vpop.permute.xlu0 %1401  ;;  %v1416_v21 = vpop.permute.xlu1 %1415  ;;  %v1451_v30 = vsel %vm1427_vm12, %v2383_v10, %v3141_v58 }
 0x11f   : > { %v1666_v41 = vsel %vm1658_vm4, %v1633_v31, %v1402_v59  ;;  %v1680_v32 = vsel %vm1658_vm4, %v1647_v20, %v1416_v21  ;;  %v1484_v8 = vsel %vm1460_vm13, %v1451_v30, %v3157_v9 }
 0x120   : > { %1374 = vrot.lane.b32.xlu0 %v2653_v55, %s2399_s26  ;;  %2289 = vmatmul.mubr.msk.bf16.gmra.mrb[4].mxu0 %vm1713_vm5, %v1666_v41  ;;  %v1517_v55 = vsel %vm1493_vm14, %v1484_v8, %v3168_v24 }
 0x121   : > { %1343 = vrot.lane.b32.xlu1 %v3220_v54, %s2398_s23  ;;  %2304 = vmatprep.mubr.msk.bf16.mxu1 %vm1713_vm5, %v1680_v32  ;;  %v1550_v56 = vsel %vm1526_vm15, %v1517_v55, %v3182_v23  ;;  %v1392_v23 = vrot.slane %v3220_v54, 1 }
 0x122   : > { %v1087_v15 = vpop.permute.xlu0 %1086  ;;  %v1101_v25 = vpop.permute.xlu1 %1100  ;;  %v1583_v58 = vsel %vm1559_vm0, %v1550_v56, %v3193_v49  ;;  %v1393_v49 = vrot.slane %v2375_v26, 1 }
 0x123   : > { %v1616_v9 = vsel %vm1592_vm1, %v1583_v58, %v1336_v34  ;;  %v1439_v31 = vsel %vm1427_vm12, %v2887_v44, %v1087_v15  ;;  %v1453_v60 = vsel %vm1427_vm12, %v2854_v40, %v1101_v25 }
 0x124   : > { %1407 = vrot.lane.b32.xlu0 %v2618_v27, %s2400_s27  ;;  %v1649_v24 = vsel %vm1625_vm3, %v1616_v9, %v1383_v28  ;;  %v1394_v1 = vsel %vm1108_vm6, %v1392_v23, %v1393_v49 }
 0x125   : > { %1388 = vrot.lane.b32.xlu1 %v3198_v43, %s2399_s26 }
 0x126   : > { %v1166_v45 = vpop.permute.xlu0 %1165  ;;  %v1418_v62 = vpop.permute.xlu1 %1417 }
 0x127   : > { %v1682_v36 = vsel %vm1658_vm4, %v1649_v24, %v1418_v62  ;;  %v1470_v28 = vsel %vm1460_vm13, %v1437_v13, %v1166_v45 }
 0x128   : > { %1409 = vrot.lane.b32.xlu0 %v2627_v37, %s2400_s27  ;;  %2305 = vmatmul.mubr.msk.bf16.gmra.mrb[4].mxu1 %vm1713_vm5, %v1682_v36 }
 0x129   : > { %1390 = vrot.lane.b32.xlu1 %v1359_v52, %s2399_s26 }
 0x12a   : > { %v1168_v27 = vpop.permute.xlu0 %1167  ;;  %v1103_v43 = vpop.permute.xlu1 %1102 }
 0x12b   : > { %v1472_v20 = vsel %vm1460_vm13, %v1439_v31, %v1168_v27  ;;  %v1455_v52 = vsel %vm1427_vm12, %v2902_v18, %v1103_v43 }
 0x12d   : > { %1423 = vrot.lane.b32.xlu1 %v1275_v53, %s2400_s27 }
 0x12e   : > { %v1203_v34 = vpop.permute.xlu0 %1202  ;;  %v1182_v16 = vpop.permute.xlu1 %1181 }
 0x12f   : > { %v1503_v12 = vsel %vm1493_vm14, %v1470_v28, %v1203_v34  ;;  %v1486_v41 = vsel %vm1460_vm13, %v1453_v60, %v1182_v16 }
 0x131   : > { %1425 = vrot.lane.b32.xlu1 %v1394_v1, %s2400_s27 }
 0x132   : > { %v1205_v48 = vpop.permute.xlu0 %1204  ;;  %v1184_v35 = vpop.permute.xlu1 %1183 }
 0x133   : > { %v1505_v21 = vsel %vm1493_vm14, %v1472_v20, %v1205_v48  ;;  %v1488_v24 = vsel %vm1460_vm13, %v1455_v52, %v1184_v35 }
 0x136   : > { %v1250_v37 = vpop.permute.xlu0 %1249  ;;  %v1219_v4 = vpop.permute.xlu1 %1218 }
 0x137   : > { %v1536_v47 = vsel %vm1526_vm15, %v1503_v12, %v1250_v37  ;;  %v1519_v44 = vsel %vm1493_vm14, %v1486_v41, %v1219_v4 }
 0x13a   : > { %v1252_v39 = vpop.permute.xlu0 %1251  ;;  %v1221_v11 = vpop.permute.xlu1 %1220 }
 0x13b   : > { %v1538_v10 = vsel %vm1526_vm15, %v1505_v21, %v1252_v39  ;;  %v1521_v36 = vsel %vm1493_vm14, %v1488_v24, %v1221_v11 }
 0x13e   : > { %v1285_v6 = vpop.permute.xlu0 %1284  ;;  %v1266_v5 = vpop.permute.xlu1 %1265 }
 0x13f   : > { %v1569_v46 = vsel %vm1559_vm0, %v1536_v47, %v1285_v6  ;;  %v1552_v8 = vsel %vm1526_vm15, %v1519_v44, %v1266_v5 }
 0x142   : > { %v1287_v38 = vpop.permute.xlu0 %1286  ;;  %v1268_v54 = vpop.permute.xlu1 %1267 }
 0x143   : > { %v1571_v15 = vsel %vm1559_vm0, %v1538_v10, %v1287_v38  ;;  %v1554_v23 = vsel %vm1526_vm15, %v1521_v36, %v1268_v54 }
 0x146   : > { %v1322_v7 = vpop.permute.xlu0 %1321  ;;  %v1301_v19 = vpop.permute.xlu1 %1300 }
 0x147   : > { %v1602_v33 = vsel %vm1592_vm1, %v1569_v46, %v1322_v7  ;;  %v1585_v57 = vsel %vm1559_vm0, %v1552_v8, %v1301_v19 }
 0x14a   : > { %v1324_v26 = vpop.permute.xlu0 %1323 }
 0x14b   : > { %v1303_v53 = vpop.permute.xlu1 %1302  ;;  %v1604_v40 = vsel %vm1592_vm1, %v1571_v15, %v1324_v26 }
 0x14c   : > { %v1587_v49 = vsel %vm1559_vm0, %v1554_v23, %v1303_v53 }
 0x14e   : > { %v1369_v0 = vpop.permute.xlu0 %1368 }
 0x14f   : > { %v1338_v63 = vpop.permute.xlu1 %1337  ;;  %v1635_v59 = vsel %vm1625_vm3, %v1602_v33, %v1369_v0 }
 0x150   : > { %v1618_v61 = vsel %vm1592_vm1, %v1585_v57, %v1338_v63 }
 0x152   : > { %v1371_v42 = vpop.permute.xlu0 %1370 }
 0x153   : > { %v1340_v29 = vpop.permute.xlu1 %1339  ;;  %v1637_v55 = vsel %vm1625_vm3, %v1604_v40, %v1371_v42 }
 0x154   : > { %v1620_v34 = vsel %vm1592_vm1, %v1587_v49, %v1340_v29 }
 0x156   : > { %v1404_v14 = vpop.permute.xlu0 %1403 }
 0x157   : > { %v1668_v2 = vsel %vm1658_vm4, %v1635_v59, %v1404_v14  ;;  %v1385_v50 = vpop.permute.xlu1 %1384 }
 0x158   : > { %2292 = vmatprep.mubr.msk.bf16.mxu0 %vm1713_vm5, %v1668_v2  ;;  %v1651_v56 = vsel %vm1625_vm3, %v1618_v61, %v1385_v50 }
 0x15a   : > { %v1089_v32 = vpop.permute.xlu0 %1088 }
 0x15b   : > { %v1387_v30 = vpop.permute.xlu1 %1386  ;;  %v1441_v47 = vsel %vm1427_vm12, %v2955_v51, %v1089_v32 }
 0x15c   : > { %v1653_v16 = vsel %vm1625_vm3, %v1620_v34, %v1387_v30 }
 0x15e   : > { %v1406_v25 = vpop.permute.xlu0 %1405 }
 0x15f   : > { %v1670_v58 = vsel %vm1658_vm4, %v1637_v55, %v1406_v25  ;;  %v1420_v9 = vpop.permute.xlu1 %1419 }
 0x160   : > { %v1684_v45 = vsel %vm1658_vm4, %v1651_v56, %v1420_v9  ;;  %2293 = vmatmul.mubr.msk.bf16.gmra.mrb[8].mxu0 %vm1713_vm5, %v1670_v58 }
 0x161   : > { %2308 = vmatprep.mubr.msk.bf16.mxu1 %vm1713_vm5, %v1684_v45 }
 0x162   : > { %v1091_v62 = vpop.permute.xlu0 %1090 }
 0x163   : > { %v1105_v27 = vpop.permute.xlu1 %1104  ;;  %v1443_v46 = vsel %vm1427_vm12, %v3008_v17, %v1091_v62 }
 0x164   : > { %v1457_v10 = vsel %vm1427_vm12, %v2971_v22, %v1105_v27 }
 0x166   : > { %v1170_v1 = vpop.permute.xlu0 %1169 }
 0x167   : > { %v1422_v48 = vpop.permute.xlu1 %1421  ;;  %v1474_v29 = vsel %vm1460_vm13, %v1441_v47, %v1170_v1  ;;  %v3373_v1 = vld [vmem:[%s3483_s2] ss:$0 sm:$0xff] }
 0x168   : > { %v1686_v18 = vsel %vm1658_vm4, %v1653_v16, %v1422_v48 }
 0x169   : > { %2309 = vmatmul.mubr.msk.bf16.gmra.mrb[8].mxu1 %vm1713_vm5, %v1686_v18 }
 0x16a   : > { %v1172_v43 = vpop.permute.xlu0 %1171 }
 0x16b   : > { %v1107_v35 = vpop.permute.xlu1 %1106  ;;  %v1476_v50 = vsel %vm1460_vm13, %v1443_v46, %v1172_v43 }
 0x16c   : > { %v1459_v56 = vsel %vm1427_vm12, %v3055_v3, %v1107_v35 }
 0x16e   : > { %v1207_v37 = vpop.permute.xlu0 %1206 }
 0x16f   : > { %v1186_v4 = vpop.permute.xlu1 %1185  ;;  %v1507_v33 = vsel %vm1493_vm14, %v1474_v29, %v1207_v37 }
 0x170   : > { %v1490_v8 = vsel %vm1460_vm13, %v1457_v10, %v1186_v4 }
 0x172   : > { %v1209_v39 = vpop.permute.xlu0 %1208 }
 0x173   : > { %v1188_v11 = vpop.permute.xlu1 %1187  ;;  %v1509_v20 = vsel %vm1493_vm14, %v1476_v50, %v1209_v39 }
 0x174   : > { %v1492_v58 = vsel %vm1460_vm13, %v1459_v56, %v1188_v11 }
 0x176   : > { %v1254_v6 = vpop.permute.xlu0 %1253 }
 0x177   : > { %v1223_v5 = vpop.permute.xlu1 %1222  ;;  %v1540_v59 = vsel %vm1526_vm15, %v1507_v33, %v1254_v6 }
 0x178   : > { %v1523_v40 = vsel %vm1493_vm14, %v1490_v8, %v1223_v5 }
 0x17a   : > { %v1256_v38 = vpop.permute.xlu0 %1255 }
 0x17b   : > { %v1225_v54 = vpop.permute.xlu1 %1224  ;;  %v1542_v21 = vsel %vm1526_vm15, %v1509_v20, %v1256_v38 }
 0x17c   : > { %v1525_v45 = vsel %vm1493_vm14, %v1492_v58, %v1225_v54 }
 0x17e   : > { %v1289_v7 = vpop.permute.xlu0 %1288 }
 0x17f   : > { %v1270_v19 = vpop.permute.xlu1 %1269  ;;  %v1573_v2 = vsel %vm1559_vm0, %v1540_v59, %v1289_v7 }
 0x180   : > { %v1556_v25 = vsel %vm1526_vm15, %v1523_v40, %v1270_v19 }
 0x182   : > { %v1291_v26 = vpop.permute.xlu0 %1290 }
 0x183   : > { %v1272_v53 = vpop.permute.xlu1 %1271  ;;  %v1575_v44 = vsel %vm1559_vm0, %v1542_v21, %v1291_v26 }
 0x184   : > { %v1558_v62 = vsel %vm1526_vm15, %v1525_v45, %v1272_v53 }
 0x186   : > { %v1326_v0 = vpop.permute.xlu0 %1325 }
 0x187   : > { %v1305_v63 = vpop.permute.xlu1 %1304  ;;  %v1606_v60 = vsel %vm1592_vm1, %v1573_v2, %v1326_v0 }
 0x188   : > { %v1589_v22 = vsel %vm1559_vm0, %v1556_v25, %v1305_v63 }
 0x18a   : > { %v1328_v13 = vpop.permute.xlu0 %1327 }
 0x18b   : > { %v1307_v28 = vpop.permute.xlu1 %1306  ;;  %v1608_v30 = vsel %vm1592_vm1, %v1575_v44, %v1328_v13 }
 0x18c   : > { %v1591_v27 = vsel %vm1559_vm0, %v1558_v62, %v1307_v28 }
 0x18e   : > { %v1373_v12 = vpop.permute.xlu0 %1372 }
 0x18f   : > { %v1342_v42 = vpop.permute.xlu1 %1341  ;;  %v1639_v51 = vsel %vm1625_vm3, %v1606_v60, %v1373_v12 }
 0x190   : > { %v1622_v9 = vsel %vm1592_vm1, %v1589_v22, %v1342_v42 }
 0x192   : > { %v1375_v31 = vpop.permute.xlu0 %1374 }
 0x193   : > { %v1344_v14 = vpop.permute.xlu1 %1343  ;;  %v1641_v15 = vsel %vm1625_vm3, %v1608_v30, %v1375_v31 }
 0x194   : > { %v1624_v3 = vsel %vm1592_vm1, %v1591_v27, %v1344_v14 }
 0x196   : > { %v1408_v41 = vpop.permute.xlu0 %1407 }
 0x197   : > { %v1672_v17 = vsel %vm1658_vm4, %v1639_v51, %v1408_v41  ;;  %v1389_v32 = vpop.permute.xlu1 %1388 }
 0x198   : > { %2296 = vmatprep.mubr.msk.bf16.mxu0 %vm1713_vm5, %v1672_v17  ;;  %v1655_v52 = vsel %vm1625_vm3, %v1622_v9, %v1389_v32 }
 0x19a   : > { %v1410_v57 = vpop.permute.xlu0 %1409 }
 0x19b   : > { %v1674_v61 = vsel %vm1658_vm4, %v1641_v15, %v1410_v57  ;;  %v1391_v55 = vpop.permute.xlu1 %1390 }
 0x19c   : > { %2297 = vmatmul.mubr.msk.bf16.gmra.mrb[12].mxu0 %vm1713_vm5, %v1674_v61  ;;  %v1657_v23 = vsel %vm1625_vm3, %v1624_v3, %v1391_v55 }
 0x19f   : > { %v1424_v24 = vpop.permute.xlu1 %1423 }
 0x1a0   : > { %v1688_v36 = vsel %vm1658_vm4, %v1655_v52, %v1424_v24 }
 0x1a1   : > { %2312 = vmatprep.mubr.msk.bf16.mxu1 %vm1713_vm5, %v1688_v36 }
 0x1a3   : > { %v1426_v49 = vpop.permute.xlu1 %1425 }
 0x1a4   : > { %v1690_v34 = vsel %vm1658_vm4, %v1657_v23, %v1426_v49 }
 0x1a5   : > { %2313 = vmatmul.mubr.msk.bf16.gmra.mrb[12].mxu1 %vm1713_vm5, %v1690_v34 }
 0x1b3   : > { %v2286_v16 = vpop.f32.mrb[0].mxu0 }
 0x1b4   : > { %v1796_v48 = vadd.f32 %v2286_v16, %v3373_v1  ;;  %v1787_v18 = vpop.f32.mrb[1].mxu0 }
 0x1b5   : > { %v1788_v43 = vadd.f32 %v3373_v1, %v1787_v18  ;;  %v2287_v35 = vpop.f32.mrb[2].mxu0 }
 0x1b6   : > { %v2232_v37 = vpack.c.bf16 %v1796_v48, %v1796_v48  ;;  %v1799_v4 = vadd.f32 %v2287_v35, %v3373_v1  ;;  %v1790_v39 = vpop.f32.mrb[3].mxu0 }
 0x1b7   : > { %v2230_v11 = vpack.c.bf16 %v1788_v43, %v1788_v43  ;;  %v1791_v6 = vadd.f32 %v3373_v1, %v1790_v39 }
 0x1b8   : > { %2045 = vst.msk [vmem:[%s3381_s7 + $0x8] sm:$0xf] %vm2042_vm2, %v2232_v37  ;;  %v2233_v5 = vpack.c.bf16 %v1799_v4, %v1799_v4 }
 0x1b9   : > { %2043 = vst.msk [vmem:[%s3381_s7] sm:$0xf] %vm2042_vm2, %v2230_v11  ;;  %v2231_v38 = vpack.c.bf16 %v1791_v6, %v1791_v6 }
 0x1ba   : > { %2046 = vst.msk [vmem:[%s3381_s7 + $0xc] sm:$0xf] %vm2042_vm2, %v2233_v5 }
 0x1bb   : > { %2044 = vst.msk [vmem:[%s3381_s7 + $0x4] sm:$0xf] %vm2042_vm2, %v2231_v38  ;;  %v2302_v54 = vpop.f32.mrb[0].mxu1 }
 0x1bc   : > { %v1860_v7 = vadd.f32 %v2302_v54, %v3373_v1  ;;  %v1851_v19 = vpop.f32.mrb[1].mxu1 }
 0x1bd   : > { %v1852_v26 = vadd.f32 %v3373_v1, %v1851_v19  ;;  %v2303_v53 = vpop.f32.mrb[2].mxu1 }
 0x1be   : > { %v2248_v0 = vpack.c.bf16 %v1860_v7, %v1860_v7  ;;  %v1863_v63 = vadd.f32 %v2303_v53, %v3373_v1  ;;  %v1854_v13 = vpop.f32.mrb[3].mxu1 }
 0x1bf   : > { %v2246_v28 = vpack.c.bf16 %v1852_v26, %v1852_v26  ;;  %v1855_v12 = vadd.f32 %v3373_v1, %v1854_v13 }
 0x1c0   : > { %2061 = vst.msk [vmem:[%s3381_s7 + $0x48] sm:$0xf] %vm2042_vm2, %v2248_v0  ;;  %v2249_v42 = vpack.c.bf16 %v1863_v63, %v1863_v63 }
 0x1c1   : > { %2059 = vst.msk [vmem:[%s3381_s7 + $0x40] sm:$0xf] %vm2042_vm2, %v2246_v28  ;;  %v2247_v47 = vpack.c.bf16 %v1855_v12, %v1855_v12 }
 0x1c2   : > { %2062 = vst.msk [vmem:[%s3381_s7 + $0x4c] sm:$0xf] %vm2042_vm2, %v2249_v42 }
 0x1c3   : > { %2060 = vst.msk [vmem:[%s3381_s7 + $0x44] sm:$0xf] %vm2042_vm2, %v2247_v47 }
 0x1f3   : > { %v2290_v29 = vpop.f32.mrb[4].mxu0 }
 0x1f4   : > { %v1812_v46 = vadd.f32 %v2290_v29, %v3373_v1  ;;  %v1803_v33 = vpop.f32.mrb[5].mxu0 }
 0x1f5   : > { %v1804_v31 = vadd.f32 %v3373_v1, %v1803_v33  ;;  %v2291_v59 = vpop.f32.mrb[6].mxu0 }
 0x1f6   : > { %v2236_v14 = vpack.c.bf16 %v1812_v46, %v1812_v46  ;;  %v1815_v2 = vadd.f32 %v2291_v59, %v3373_v1  ;;  %v1806_v50 = vpop.f32.mrb[7].mxu0 }
 0x1f7   : > { %v2234_v60 = vpack.c.bf16 %v1804_v31, %v1804_v31  ;;  %v1807_v20 = vadd.f32 %v3373_v1, %v1806_v50 }
 0x1f8   : > { %2049 = vst.msk [vmem:[%s3381_s7 + $0x18] sm:$0xf] %vm2042_vm2, %v2236_v14  ;;  %v2237_v51 = vpack.c.bf16 %v1815_v2, %v1815_v2 }
 0x1f9   : > { %2047 = vst.msk [vmem:[%s3381_s7 + $0x10] sm:$0xf] %vm2042_vm2, %v2234_v60  ;;  %v2235_v41 = vpack.c.bf16 %v1807_v20, %v1807_v20 }
 0x1fa   : > { %2050 = vst.msk [vmem:[%s3381_s7 + $0x1c] sm:$0xf] %vm2042_vm2, %v2237_v51 }
 0x1fb   : > { %2048 = vst.msk [vmem:[%s3381_s7 + $0x14] sm:$0xf] %vm2042_vm2, %v2235_v41  ;;  %v2306_v21 = vpop.f32.mrb[4].mxu1 }
 0x1fc   : > { %v1876_v17 = vadd.f32 %v2306_v21, %v3373_v1  ;;  %v1867_v32 = vpop.f32.mrb[5].mxu1 }
 0x1fd   : > { %v1868_v44 = vadd.f32 %v3373_v1, %v1867_v32  ;;  %v2307_v10 = vpop.f32.mrb[6].mxu1 }
 0x1fe   : > { %v2252_v30 = vpack.c.bf16 %v1876_v17, %v1876_v17  ;;  %v1879_v8 = vadd.f32 %v2307_v10, %v3373_v1  ;;  %v1870_v15 = vpop.f32.mrb[7].mxu1 }
 0x1ff   : > { %v2250_v57 = vpack.c.bf16 %v1868_v44, %v1868_v44  ;;  %v1871_v40 = vadd.f32 %v3373_v1, %v1870_v15 }
 0x200   : > { %2065 = vst.msk [vmem:[%s3381_s7 + $0x58] sm:$0xf] %vm2042_vm2, %v2252_v30  ;;  %v2253_v61 = vpack.c.bf16 %v1879_v8, %v1879_v8 }
 0x201   : > { %2063 = vst.msk [vmem:[%s3381_s7 + $0x50] sm:$0xf] %vm2042_vm2, %v2250_v57  ;;  %v2251_v55 = vpack.c.bf16 %v1871_v40, %v1871_v40 }
 0x202   : > { %2066 = vst.msk [vmem:[%s3381_s7 + $0x5c] sm:$0xf] %vm2042_vm2, %v2253_v61 }
 0x203   : > { %2064 = vst.msk [vmem:[%s3381_s7 + $0x54] sm:$0xf] %vm2042_vm2, %v2251_v55 }
 0x233   : > { %v2294_v25 = vpop.f32.mrb[8].mxu0 }
 0x234   : > { %v1828_v56 = vadd.f32 %v2294_v25, %v3373_v1  ;;  %v1819_v22 = vpop.f32.mrb[9].mxu0 }
 0x235   : > { %v1820_v58 = vadd.f32 %v3373_v1, %v1819_v22  ;;  %v2295_v9 = vpop.f32.mrb[10].mxu0 }
 0x236   : > { %v2240_v45 = vpack.c.bf16 %v1828_v56, %v1828_v56  ;;  %v1831_v52 = vadd.f32 %v2295_v9, %v3373_v1  ;;  %v1822_v24 = vpop.f32.mrb[11].mxu0 }
 0x237   : > { %v2238_v62 = vpack.c.bf16 %v1820_v58, %v1820_v58  ;;  %v1823_v36 = vadd.f32 %v3373_v1, %v1822_v24 }
 0x238   : > { %2053 = vst.msk [vmem:[%s3381_s7 + $0x28] sm:$0xf] %vm2042_vm2, %v2240_v45  ;;  %v2241_v27 = vpack.c.bf16 %v1831_v52, %v1831_v52 }
 0x239   : > { %2051 = vst.msk [vmem:[%s3381_s7 + $0x20] sm:$0xf] %vm2042_vm2, %v2238_v62  ;;  %v2239_v3 = vpack.c.bf16 %v1823_v36, %v1823_v36 }
 0x23a   : > { %2054 = vst.msk [vmem:[%s3381_s7 + $0x2c] sm:$0xf] %vm2042_vm2, %v2241_v27 }
 0x23b   : > { %2052 = vst.msk [vmem:[%s3381_s7 + $0x24] sm:$0xf] %vm2042_vm2, %v2239_v3 }
 0x23c   : > { %v2310_v23 = vpop.f32.mrb[8].mxu1 }
 0x23d   : > { %v1892_v49 = vadd.f32 %v2310_v23, %v3373_v1  ;;  %v1883_v34 = vpop.f32.mrb[9].mxu1 }
 0x23e   : > { %v1884_v16 = vadd.f32 %v3373_v1, %v1883_v34  ;;  %v2311_v48 = vpop.f32.mrb[10].mxu1 }
 0x23f   : > { %v2256_v18 = vpack.c.bf16 %v1892_v49, %v1892_v49  ;;  %v1895_v43 = vadd.f32 %v2311_v48, %v3373_v1  ;;  %v1886_v35 = vpop.f32.mrb[11].mxu1 }
 0x240   : > { %v2254_v37 = vpack.c.bf16 %v1884_v16, %v1884_v16  ;;  %v1887_v4 = vadd.f32 %v3373_v1, %v1886_v35 }
 0x241   : > { %2069 = vst.msk [vmem:[%s3381_s7 + $0x68] sm:$0xf] %vm2042_vm2, %v2256_v18  ;;  %v2257_v39 = vpack.c.bf16 %v1895_v43, %v1895_v43 }
 0x242   : > { %2067 = vst.msk [vmem:[%s3381_s7 + $0x60] sm:$0xf] %vm2042_vm2, %v2254_v37  ;;  %v2255_v11 = vpack.c.bf16 %v1887_v4, %v1887_v4 }
 0x243   : > { %2070 = vst.msk [vmem:[%s3381_s7 + $0x6c] sm:$0xf] %vm2042_vm2, %v2257_v39 }
 0x244   : > { %2068 = vst.msk [vmem:[%s3381_s7 + $0x64] sm:$0xf] %vm2042_vm2, %v2255_v11 }
 0x26f   : > { %v2298_v6 = vpop.f32.mrb[12].mxu0 }
 0x270   : > { %v1844_v5 = vadd.f32 %v2298_v6, %v3373_v1  ;;  %v1835_v38 = vpop.f32.mrb[13].mxu0 }
 0x271   : > { %v1836_v54 = vadd.f32 %v3373_v1, %v1835_v38  ;;  %v2299_v7 = vpop.f32.mrb[14].mxu0 }
 0x272   : > { %v2244_v19 = vpack.c.bf16 %v1844_v5, %v1844_v5  ;;  %v1847_v26 = vadd.f32 %v2299_v7, %v3373_v1  ;;  %v1838_v53 = vpop.f32.mrb[15].mxu0 }
 0x273   : > { %v2242_v0 = vpack.c.bf16 %v1836_v54, %v1836_v54  ;;  %v1839_v63 = vadd.f32 %v3373_v1, %v1838_v53 }
 0x274   : > { %2057 = vst.msk [vmem:[%s3381_s7 + $0x38] sm:$0xf] %vm2042_vm2, %v2244_v19  ;;  %v2245_v13 = vpack.c.bf16 %v1847_v26, %v1847_v26 }
 0x275   : > { %2055 = vst.msk [vmem:[%s3381_s7 + $0x30] sm:$0xf] %vm2042_vm2, %v2242_v0  ;;  %v2243_v28 = vpack.c.bf16 %v1839_v63, %v1839_v63 }
 0x276   : > { %2058 = vst.msk [vmem:[%s3381_s7 + $0x3c] sm:$0xf] %vm2042_vm2, %v2245_v13 }
 0x277   : > { %2056 = vst.msk [vmem:[%s3381_s7 + $0x34] sm:$0xf] %vm2042_vm2, %v2243_v28 }
 0x278   : > { %v2314_v12 = vpop.f32.mrb[12].mxu1 }
 0x279   : > { %v1908_v42 = vadd.f32 %v2314_v12, %v3373_v1  ;;  %v1899_v47 = vpop.f32.mrb[13].mxu1 }
 0x27a   : > { %v1900_v29 = vadd.f32 %v3373_v1, %v1899_v47  ;;  %v2315_v46 = vpop.f32.mrb[14].mxu1 }
 0x27b   : > { %v2260_v33 = vpack.c.bf16 %v1908_v42, %v1908_v42  ;;  %v1911_v31 = vadd.f32 %v2315_v46, %v3373_v1  ;;  %v1902_v59 = vpop.f32.mrb[15].mxu1 }
 0x27c   : > { %v2258_v14 = vpack.c.bf16 %v1900_v29, %v1900_v29  ;;  %v1903_v2 = vadd.f32 %v3373_v1, %v1902_v59 }
 0x27d   : > { %2073 = vst.msk [vmem:[%s3381_s7 + $0x78] sm:$0xf] %vm2042_vm2, %v2260_v33  ;;  %v2261_v50 = vpack.c.bf16 %v1911_v31, %v1911_v31 }
 0x27e   : > { %2071 = vst.msk [vmem:[%s3381_s7 + $0x70] sm:$0xf] %vm2042_vm2, %v2258_v14  ;;  %v2259_v60 = vpack.c.bf16 %v1903_v2, %v1903_v2 }
 0x27f   : > { %2074 = vst.msk [vmem:[%s3381_s7 + $0x7c] sm:$0xf] %vm2042_vm2, %v2261_v50 }
 0x280   : > { %2072 = vst.msk [vmem:[%s3381_s7 + $0x74] sm:$0xf] %vm2042_vm2, %v2259_v60 }
 0x281 PF: > { %s13_s12 = sadd.s32 1, %s2390_s12  }
 0x282   : > { %p10_p4 = scmp.ge.s32.totalorder %s13_s12, 4  }
 0x284   :  { %12 = sbr.rel (!%p10_p4) target bundleno = 1 (0x1), region = 63 }

</bundles_post_ra>
